<compile_context>
chip_gen: v7x
topology: tpu7x:2x2x1
jax: 0.10.0
libtpu: 0.0.40
codegen_flags: <defaults>
</compile_context>

<pallas_src>
import functools

import jax
import jax.numpy as jnp
import numpy as np
from jax.experimental import pallas as pl
from jax.experimental.pallas import tpu as pltpu


def _encode_kernel(x_ref, w1_ref, wms_ref, noise_ref, z_ref):
    # hidden = relu(X @ W1)  (MXU matmul, f32 accumulate; VPU relu)
    h = jnp.dot(x_ref[...], w1_ref[...], preferred_element_type=jnp.float32)
    h = jnp.maximum(h, 0.0)
    # One fused matmul for [mean | logstd]  (halves MXU pushes, 32 lanes dense)
    ms = jnp.dot(h, wms_ref[...], preferred_element_type=jnp.float32)
    h2 = noise_ref.shape[1]
    mean = ms[:, :h2]
    logstd = ms[:, h2:]
    # Z = noise * exp(logstd) + mean   (EUP exp, VPU fma)
    z_ref[...] = noise_ref[...] * jnp.exp(logstd) + mean


def _decode_kernel(zi_ref, zjt_ref, a_ref):
    # logits = Z_i @ (Z^T)_j : natural [M,K]@[K,N] MXU layout, no relayout.
    logits = jnp.dot(zi_ref[...], zjt_ref[...],
                     preferred_element_type=jnp.float32)
    # sigmoid(x) == 0.5 * (tanh(0.5 * x) + 1): one EUP push, no VPU divide.
    a_ref[...] = (0.5 * (jnp.tanh(0.5 * logits) + 1.0)).astype(a_ref.dtype)


def _encode(x, w1, wms, noise, *, tile):
    n_pad, input_dim = x.shape
    h1 = w1.shape[1]
    h2 = noise.shape[1]
    grid_rows = pl.cdiv(n_pad, tile)
    flops = n_pad * (2 * input_dim * h1 + 2 * h1 * (2 * h2) + 2 * h2)
    bytes_accessed = 4 * (n_pad * input_dim + input_dim * h1 + h1 * 2 * h2
                          + 2 * n_pad * h2)
    return pl.pallas_call(
        _encode_kernel,
        out_shape=jax.ShapeDtypeStruct((n_pad, h2), jnp.float32),
        grid=(grid_rows,),
        in_specs=[
            pl.BlockSpec((tile, input_dim), lambda i: (i, 0)),   # X row block
            pl.BlockSpec((input_dim, h1), lambda i: (0, 0)),     # W1 resident
            pl.BlockSpec((h1, 2 * h2), lambda i: (0, 0)),        # [Wm | Ws]
            pl.BlockSpec((tile, h2), lambda i: (i, 0)),          # noise rows
        ],
        out_specs=pl.BlockSpec((tile, h2), lambda i: (i, 0)),
        compiler_params=pltpu.CompilerParams(
            dimension_semantics=("parallel",)),
        cost_estimate=pl.CostEstimate(
            flops=flops,
            transcendentals=n_pad * h2,
            bytes_accessed=bytes_accessed),
    )(x, w1, wms, noise)


def _decode(z, zt, *, n, tile_i, tile_j, out_dtype):
    n_pad, h2 = z.shape
    gi = pl.cdiv(n, tile_i)
    gj = pl.cdiv(n, tile_j)
    out_isize = np.dtype(out_dtype).itemsize
    # Double-buffered output tile dominates VMEM. Scale the scoped limit with
    # the tile (so >=1024 tiles compile on v5e/v6e), capped at 64 MiB so we
    # never request more than v7x's physical VMEM.
    vmem_need = (2 * tile_i * tile_j * out_isize
                 + 2 * (tile_i * h2 + h2 * tile_j) * 4)
    vmem_limit = int(min(max(2 * vmem_need, 32 * 1024 * 1024),
                         64 * 1024 * 1024))
    return pl.pallas_call(
        _decode_kernel,
        out_shape=jax.ShapeDtypeStruct((n, n), out_dtype),
        grid=(gi, gj),
        in_specs=[
            pl.BlockSpec((tile_i, h2), lambda i, j: (i, 0)),   # Z rows (LHS)
            pl.BlockSpec((h2, tile_j), lambda i, j: (0, j)),   # Z^T cols (RHS)
        ],
        out_specs=pl.BlockSpec((tile_i, tile_j), lambda i, j: (i, j)),
        compiler_params=pltpu.CompilerParams(
            dimension_semantics=("parallel", "parallel"),
            vmem_limit_bytes=vmem_limit),
        cost_estimate=pl.CostEstimate(
            flops=2 * n * n * h2,
            transcendentals=n * n,
            bytes_accessed=(n * n * out_isize            # A_pred writeback
                            + gi * tile_i * h2 * 4       # zi: re-read per i
                            + gi * gj * h2 * tile_j * 4  # zjt: re-read per step
                            )),
    )(z, zt)


@functools.partial(jax.jit,
                   static_argnames=("tile_i", "tile_j", "enc_tile", "out_dtype"))
def vgae_forward(x, w1, wm, ws, noise, *,
                 tile_i=512, tile_j=1024, enc_tile=1024,
                 out_dtype=jnp.float32):
    """A_pred = sigmoid(Z @ Z.T) with Z = noise*exp(H@Ws) + H@Wm, H=relu(X@W1)."""
    n = x.shape[0]
    n_pad = 128 * pl.cdiv(n, 128)   # lane alignment only; NOT tied to the tiles
    if n_pad != n:
        pad = n_pad - n
        # Zero-padded rows produce Z rows of 0*exp(0)+0 = 0; they only feed
        # decode output positions >= n, which are never written (out is (n,n)).
        x = jnp.pad(x, ((0, pad), (0, 0)))
        noise = jnp.pad(noise, ((0, pad), (0, 0)))

    def _clip(t):  # keep tiles (8,128)-aligned and no larger than the data
        return max(128, (min(t, n_pad) // 128) * 128)

    tile_i, tile_j, enc_tile = _clip(tile_i), _clip(tile_j), _clip(enc_tile)

    wms = jnp.concatenate([wm, ws], axis=1)     # fused (h1, 2*h2) weight
    z = _encode(x, w1, wms, noise, tile=enc_tile)
    # Layout plumbing, not compute: Z^T is only n_pad*h2*4 bytes (tiny vs the
    # N^2 output) and gives the decoder a lane-dense, contiguous RHS.
    zt = z.T
    return _decode(z, zt, n=n, tile_i=tile_i, tile_j=tile_j,
                   out_dtype=out_dtype)


def glorot_init(key, input_dim, output_dim):
    # Deterministic glorot-uniform, mirroring the reference's init range.
    init_range = np.sqrt(6.0 / (input_dim + output_dim))
    u = jax.random.uniform(key, (input_dim, output_dim), dtype=jnp.float32)
    return u * (2.0 * init_range) - init_range


def vgae_ref(x, w1, wm, ws, noise):
    h = jnp.maximum(x @ w1, 0.0)
    mean = h @ wm
    logstd = h @ ws
    z = noise * jnp.exp(logstd) + mean
    return jax.nn.sigmoid(z @ z.T)


if __name__ == "__main__":
    # Small synthetic sizes: N nodes, input/hidden dims (match VGAE layout).
    N, INPUT_DIM, HIDDEN1, HIDDEN2 = 256, 32, 32, 16

    key = jax.random.PRNGKey(0)
    kx, k1, km, ks, kn = jax.random.split(key, 5)

    X = jax.random.normal(kx, (N, INPUT_DIM), dtype=jnp.float32)
    W1 = glorot_init(k1, INPUT_DIM, HIDDEN1)     # base_gcn.weight
    Wm = glorot_init(km, HIDDEN1, HIDDEN2)       # gcn_mean.weight
    Ws = glorot_init(ks, HIDDEN1, HIDDEN2)       # gcn_logstddev.weight
    # torch.randn(X.size(0), hidden2_dim) -> deterministic JAX normal noise.
    noise = jax.random.normal(kn, (N, HIDDEN2), dtype=jnp.float32)

    a_pred = jax.block_until_ready(vgae_forward(X, W1, Wm, Ws, noise))

    # Sanity check against a pure-JAX reference.
    a_expected = jax.block_until_ready(vgae_ref(X, W1, Wm, Ws, noise))
    np.testing.assert_allclose(np.asarray(a_pred), np.asarray(a_expected),
                               rtol=1e-5, atol=1e-5)

    print("KERNEL_OK")
</pallas_src>

<mosaic_0001>
module attributes {stable_mosaic.version = 11 : i64} {
  func.func @_decode_kernel(%arg0: i32, %arg1: i32, %arg2: memref<256x16xf32, #tpu.memory_space<vmem>>, %arg3: memref<16x256xf32, #tpu.memory_space<vmem>>, %arg4: memref<256x256xf32, #tpu.memory_space<vmem>>) attributes {dimension_semantics = [#tpu.dimension_semantics<parallel>, #tpu.dimension_semantics<parallel>], iteration_bounds = array<i64: 1, 1>, scalar_prefetch = 0 : i64, scratch_operands = 0 : i64, tpu.core_type = #tpu.core_type<tc>, window_params = [{transform_indices = @transform_0, window_bounds = array<i64: 256, 16>}, {transform_indices = @transform_1, window_bounds = array<i64: 16, 256>}, {transform_indices = @transform_2, window_bounds = array<i64: 256, 256>}]} {
    %c0 = arith.constant 0 : index
    %c0_0 = arith.constant 0 : index
    %0 = vector.load %arg2[%c0, %c0_0] : memref<256x16xf32, #tpu.memory_space<vmem>>, vector<256x16xf32>
    %c0_1 = arith.constant 0 : index
    %c0_2 = arith.constant 0 : index
    %1 = vector.load %arg3[%c0_1, %c0_2] : memref<16x256xf32, #tpu.memory_space<vmem>>, vector<16x256xf32>
    %cst = arith.constant dense<0.000000e+00> : vector<256x256xf32>
    %2 = tpu.matmul %0, %1, %cst {dimension_numbers = #tpu.dot_dimension_numbers<[1], [0], [0], [1], [0, 0, 1, 1], [], []>} : vector<256x16xf32>, vector<16x256xf32>, vector<256x256xf32> -> vector<256x256xf32>
    %cst_3 = arith.constant 5.000000e-01 : f32
    %3 = vector.broadcast %cst_3 : f32 to vector<256x256xf32>
    %4 = arith.mulf %3, %2 : vector<256x256xf32>
    %5 = math.tanh %4 : vector<256x256xf32>
    %cst_4 = arith.constant 1.000000e+00 : f32
    %6 = vector.broadcast %cst_4 : f32 to vector<256x256xf32>
    %7 = arith.addf %5, %6 : vector<256x256xf32>
    %cst_5 = arith.constant 5.000000e-01 : f32
    %8 = vector.broadcast %cst_5 : f32 to vector<256x256xf32>
    %9 = arith.mulf %8, %7 : vector<256x256xf32>
    %c0_6 = arith.constant 0 : index
    %c0_7 = arith.constant 0 : index
    %10 = vector.load %arg4[%c0_6, %c0_7] : memref<256x256xf32, #tpu.memory_space<vmem>>, vector<256x256xf32>
    tpu.vector_store %arg4[%c0_6, %c0_7], %9 {strides = array<i32>} : memref<256x256xf32, #tpu.memory_space<vmem>>, vector<256x256xf32>,
    return
  }
  func.func @transform_0(%arg0: i32, %arg1: i32) -> (i32, i32) {
    %c0_i32 = arith.constant 0 : i32
    %c0_i32_0 = arith.constant 0 : i32
    return %arg0, %c0_i32 : i32, i32
  }
  func.func @transform_1(%arg0: i32, %arg1: i32) -> (i32, i32) {
    %c0_i32 = arith.constant 0 : i32
    %c0_i32_0 = arith.constant 0 : i32
    return %c0_i32, %arg1 : i32, i32
  }
  func.func @transform_2(%arg0: i32, %arg1: i32) -> (i32, i32) {
    %c0_i32 = arith.constant 0 : i32
    return %arg0, %arg1 : i32, i32
  }
}

module attributes {stable_mosaic.version = 11 : i64} {
  func.func @_encode_kernel(%arg0: i32, %arg1: memref<256x32xf32, #tpu.memory_space<vmem>>, %arg2: memref<32x32xf32, #tpu.memory_space<vmem>>, %arg3: memref<32x32xf32, #tpu.memory_space<vmem>>, %arg4: memref<256x16xf32, #tpu.memory_space<vmem>>, %arg5: memref<256x16xf32, #tpu.memory_space<vmem>>) attributes {dimension_semantics = [#tpu.dimension_semantics<parallel>], iteration_bounds = array<i64: 1>, scalar_prefetch = 0 : i64, scratch_operands = 0 : i64, tpu.core_type = #tpu.core_type<tc>, window_params = [{transform_indices = @transform_0, window_bounds = array<i64: 256, 32>}, {pipeline_mode = #tpu.pipeline_mode<synchronous>, transform_indices = @transform_1, window_bounds = array<i64: 32, 32>}, {pipeline_mode = #tpu.pipeline_mode<synchronous>, transform_indices = @transform_2, window_bounds = array<i64: 32, 32>}, {transform_indices = @transform_3, window_bounds = array<i64: 256, 16>}, {transform_indices = @transform_4, window_bounds = array<i64: 256, 16>}]} {
    %c0 = arith.constant 0 : index
    %c0_0 = arith.constant 0 : index
    %0 = vector.load %arg1[%c0, %c0_0] : memref<256x32xf32, #tpu.memory_space<vmem>>, vector<256x32xf32>
    %c0_1 = arith.constant 0 : index
    %c0_2 = arith.constant 0 : index
    %1 = vector.load %arg2[%c0_1, %c0_2] : memref<32x32xf32, #tpu.memory_space<vmem>>, vector<32x32xf32>
    %cst = arith.constant dense<0.000000e+00> : vector<256x32xf32>
    %2 = tpu.matmul %0, %1, %cst {dimension_numbers = #tpu.dot_dimension_numbers<[1], [0], [0], [1], [0, 0, 1, 1], [], []>} : vector<256x32xf32>, vector<32x32xf32>, vector<256x32xf32> -> vector<256x32xf32>
    %cst_3 = arith.constant 0.000000e+00 : f32
    %3 = vector.broadcast %cst_3 : f32 to vector<256x32xf32>
    %4 = arith.maximumf %2, %3 : vector<256x32xf32>
    %c0_4 = arith.constant 0 : index
    %c0_5 = arith.constant 0 : index
    %5 = vector.load %arg3[%c0_4, %c0_5] : memref<32x32xf32, #tpu.memory_space<vmem>>, vector<32x32xf32>
    %cst_6 = arith.constant dense<0.000000e+00> : vector<256x32xf32>
    %6 = tpu.matmul %4, %5, %cst_6 {dimension_numbers = #tpu.dot_dimension_numbers<[1], [0], [0], [1], [0, 0, 1, 1], [], []>} : vector<256x32xf32>, vector<32x32xf32>, vector<256x32xf32> -> vector<256x32xf32>
    %7 = vector.extract_strided_slice %6 {offsets = [0, 0], sizes = [256, 16], strides = [1, 1]} : vector<256x32xf32> to vector<256x16xf32>
    %8 = vector.extract_strided_slice %6 {offsets = [0, 16], sizes = [256, 16], strides = [1, 1]} : vector<256x32xf32> to vector<256x16xf32>
    %c0_7 = arith.constant 0 : index
    %c0_8 = arith.constant 0 : index
    %9 = vector.load %arg4[%c0_7, %c0_8] : memref<256x16xf32, #tpu.memory_space<vmem>>, vector<256x16xf32>
    %10 = math.exp %8 : vector<256x16xf32>
    %11 = arith.mulf %9, %10 : vector<256x16xf32>
    %12 = arith.addf %11, %7 : vector<256x16xf32>
    %c0_9 = arith.constant 0 : index
    %c0_10 = arith.constant 0 : index
    %13 = vector.load %arg5[%c0_9, %c0_10] : memref<256x16xf32, #tpu.memory_space<vmem>>, vector<256x16xf32>
    tpu.vector_store %arg5[%c0_9, %c0_10], %12 {strides = array<i32>} : memref<256x16xf32, #tpu.memory_space<vmem>>, vector<256x16xf32>,
    return
  }
  func.func @transform_0(%arg0: i32) -> (i32, i32) {
    %c0_i32 = arith.constant 0 : i32
    %c0_i32_0 = arith.constant 0 : i32
    return %arg0, %c0_i32 : i32, i32
  }
  func.func @transform_1(%arg0: i32) -> (i32, i32) {
    %c0_i32 = arith.constant 0 : i32
    %c0_i32_0 = arith.constant 0 : i32
    %c0_i32_1 = arith.constant 0 : i32
    return %c0_i32, %c0_i32_0 : i32, i32
  }
  func.func @transform_2(%arg0: i32) -> (i32, i32) {
    %c0_i32 = arith.constant 0 : i32
    %c0_i32_0 = arith.constant 0 : i32
    %c0_i32_1 = arith.constant 0 : i32
    return %c0_i32, %c0_i32_0 : i32, i32
  }
  func.func @transform_3(%arg0: i32) -> (i32, i32) {
    %c0_i32 = arith.constant 0 : i32
    %c0_i32_0 = arith.constant 0 : i32
    return %arg0, %c0_i32 : i32, i32
  }
  func.func @transform_4(%arg0: i32) -> (i32, i32) {
    %c0_i32 = arith.constant 0 : i32
    %c0_i32_0 = arith.constant 0 : i32
    return %arg0, %c0_i32 : i32, i32
  }
}

</mosaic_0001>

<bundles_post_ra>
// kernel: vgae_forward.3
= control target key start
LH: loop header
LB: loop body
LE: loop exit
PB: predicated region body
PF: predicated region fallthrough
CT: control target
= control target key end

     0   :  { %v932_v5 = vmov 0.0   ;;  %vm48_vm0 = vcmask 130048   ;;  %s1135_s0 = inlined_call_operand.vmem [shape: f32[256,16], index: 0, kind: input, shape index: {}]   ;;  %s1136_s1 = inlined_call_operand.vmem [shape: f32[16,256], index: 1, kind: input, shape index: {}]   ;;  %s1137_s2 = inlined_call_operand.hbm [shape: f32[256,256], index: 2, kind: output, shape index: {}]  }
   0x1   :  { %v45_v0 = vld [vmem:[%s1136_s1 + $0x8] sm:$0xff]  ;;  %v47_v1 = vld [vmem:[%s1136_s1 + $0x18] sm:$0xff]  ;;  %v44_v2 = vld [vmem:[%s1136_s1] sm:$0xff]  ;;  %209 = vmatprep.mubr.f32.mxu0 %v932_v5  ;;  %305 = vmatprep.mubr.f32.mxu1 %v932_v5 }
   0x2   :  { %v770_v3 = vpack.c.bf16 %v47_v1, %v45_v0  ;;  %v46_v4 = vld [vmem:[%s1136_s1 + $0x10] sm:$0xff]  ;;  %v12_v7 = vld [vmem:[%s1135_s0] sm:$0xff]  ;;  %v13_v9 = vld [vmem:[%s1135_s0 + $0x8] sm:$0xff] }
   0x3   :  { %v772_v6 = vpack.c.bf16 %v46_v4, %v44_v2  ;;  %v28_v8 = vld [vmem:[%s1135_s0 + $0x80] sm:$0xff]  ;;  %v29_v10 = vld [vmem:[%s1135_s0 + $0x88] sm:$0xff]  ;;  %v14_v11 = vld [vmem:[%s1135_s0 + $0x10] sm:$0xff] }
   0x4   :  { %771 = vmatprep.subr.bf16.mxu0 %v770_v3  ;;  %774 = vmatprep.subr.bf16.mxu1 %v770_v3  ;;  %v30_v12 = vld [vmem:[%s1135_s0 + $0x90] sm:$0xff] }
   0x5   :  { %773 = vmatpush1.bf16.msra.mxu0 %v772_v6  ;;  %775 = vmatpush1.bf16.msra.mxu1 %v772_v6 }
   0x8   :  { %738 = vmatmul.mubr.msk.f32.vlgmr.msra.gmra.mrb[0].mxu0 %vm48_vm0, %v12_v7  ;;  %754 = vmatmul.mubr.msk.f32.vlgmr.msra.gmra.mrb[0].mxu1 %vm48_vm0, %v28_v8 }
   0x9   :  { %215 = vmatprep.mubr.f32.mxu0 %v932_v5  ;;  %311 = vmatprep.mubr.f32.mxu1 %v932_v5 }
   0xc   :  { %739 = vmatmul.mubr.msk.f32.gmra.mrb[2].mxu0 %vm48_vm0, %v13_v9  ;;  %755 = vmatmul.mubr.msk.f32.gmra.mrb[2].mxu1 %vm48_vm0, %v29_v10 }
   0xd   :  { %221 = vmatprep.mubr.f32.mxu0 %v932_v5  ;;  %317 = vmatprep.mubr.f32.mxu1 %v932_v5 }
   0xe   :  { %7 = vsyncpa [#allocation3], 0  ;;  %v15_v13 = vld [vmem:[%s1135_s0 + $0x18] sm:$0xff]  ;;  %v16_v15 = vld [vmem:[%s1135_s0 + $0x20] sm:$0xff] }
   0xf   :  { %v31_v14 = vld [vmem:[%s1135_s0 + $0x98] sm:$0xff]  ;;  %v32_v16 = vld [vmem:[%s1135_s0 + $0xa0] sm:$0xff]  ;;  %v17_v17 = vld [vmem:[%s1135_s0 + $0x28] sm:$0xff] }
  0x10   :  { %740 = vmatmul.mubr.msk.f32.gmra.mrb[4].mxu0 %vm48_vm0, %v14_v11  ;;  %756 = vmatmul.mubr.msk.f32.gmra.mrb[4].mxu1 %vm48_vm0, %v30_v12  ;;  %v33_v18 = vld [vmem:[%s1135_s0 + $0xa8] sm:$0xff]  ;;  %v18_v19 = vld [vmem:[%s1135_s0 + $0x30] sm:$0xff]  ;;  %v19_v21 = vld [vmem:[%s1135_s0 + $0x38] sm:$0xff] }
  0x11   :  { %227 = vmatprep.mubr.f32.mxu0 %v932_v5  ;;  %323 = vmatprep.mubr.f32.mxu1 %v932_v5  ;;  %v34_v20 = vld [vmem:[%s1135_s0 + $0xb0] sm:$0xff]  ;;  %v35_v22 = vld [vmem:[%s1135_s0 + $0xb8] sm:$0xff]  ;;  %v20_v23 = vld [vmem:[%s1135_s0 + $0x40] sm:$0xff] }
  0x12   :  { %v36_v24 = vld [vmem:[%s1135_s0 + $0xc0] sm:$0xff]  ;;  %v21_v25 = vld [vmem:[%s1135_s0 + $0x48] sm:$0xff]  ;;  %v22_v27 = vld [vmem:[%s1135_s0 + $0x50] sm:$0xff] }
  0x13   :  { %v37_v26 = vld [vmem:[%s1135_s0 + $0xc8] sm:$0xff]  ;;  %v38_v28 = vld [vmem:[%s1135_s0 + $0xd0] sm:$0xff]  ;;  %v23_v29 = vld [vmem:[%s1135_s0 + $0x58] sm:$0xff] }
  0x14   :  { %741 = vmatmul.mubr.msk.f32.gmra.mrb[6].mxu0 %vm48_vm0, %v15_v13  ;;  %757 = vmatmul.mubr.msk.f32.gmra.mrb[6].mxu1 %vm48_vm0, %v31_v14  ;;  %v39_v30 = vld [vmem:[%s1135_s0 + $0xd8] sm:$0xff]  ;;  %v24_v31 = vld [vmem:[%s1135_s0 + $0x60] sm:$0xff]  ;;  %v25_v33 = vld [vmem:[%s1135_s0 + $0x68] sm:$0xff] }
  0x15   :  { %233 = vmatprep.mubr.f32.mxu0 %v932_v5  ;;  %329 = vmatprep.mubr.f32.mxu1 %v932_v5  ;;  %v40_v32 = vld [vmem:[%s1135_s0 + $0xe0] sm:$0xff]  ;;  %v41_v34 = vld [vmem:[%s1135_s0 + $0xe8] sm:$0xff]  ;;  %v26_v35 = vld [vmem:[%s1135_s0 + $0x70] sm:$0xff] }
  0x16   :  { %v42_v36 = vld [vmem:[%s1135_s0 + $0xf0] sm:$0xff]  ;;  %v27_v37 = vld [vmem:[%s1135_s0 + $0x78] sm:$0xff] }
  0x17   :  { %v43_v38 = vld [vmem:[%s1135_s0 + $0xf8] sm:$0xff]  ;;  %s933_s0 = smov [#allocation2]  }
  0x18   :  { %742 = vmatmul.mubr.msk.f32.gmra.mrb[8].mxu0 %vm48_vm0, %v16_v15  ;;  %758 = vmatmul.mubr.msk.f32.gmra.mrb[8].mxu1 %vm48_vm0, %v32_v16  ;;  %s727_s22 = sshll.u32 %s933_s0, 4  ;;  %s728_s22 = int_to_ptr.vmem [resolvable:$true] %s727_s22 }
  0x19   :  { %239 = vmatprep.mubr.f32.mxu0 %v932_v5  ;;  %335 = vmatprep.mubr.f32.mxu1 %v932_v5  ;;  %s908_s23 = scalar_lea.vmem %s728_s22, 8192  ;;  %p913_p1 = scmp.lt.s32.totalorder %s728_s22, %s728_s22 }
  0x1a   :  { %p909_p0 = scmp.ne.s32.totalorder %s728_s22, %s908_s23  ;;  %p914_p2 = scmp.lt.s32.totalorder %s908_s23, %s908_s23 }
  0x1c   :  { %743 = vmatmul.mubr.msk.f32.gmra.mrb[10].mxu0 %vm48_vm0, %v17_v17  ;;  %759 = vmatmul.mubr.msk.f32.gmra.mrb[10].mxu1 %vm48_vm0, %v33_v18  ;;  %p915_p3 = por %p914_p2, %p913_p1 }
  0x1d   :  { %245 = vmatprep.mubr.f32.mxu0 %v932_v5  ;;  %341 = vmatprep.mubr.f32.mxu1 %v932_v5 }
  0x1e   :  { %p916_p4 = pnand %p915_p3, %p909_p0 }
  0x20   :  { %744 = vmatmul.mubr.msk.f32.gmra.mrb[12].mxu0 %vm48_vm0, %v18_v19  ;;  %760 = vmatmul.mubr.msk.f32.gmra.mrb[12].mxu1 %vm48_vm0, %v34_v20 }
  0x21   :  { %251 = vmatprep.mubr.f32.mxu0 %v932_v5  ;;  %347 = vmatprep.mubr.f32.mxu1 %v932_v5 }
  0x24   :  { %745 = vmatmul.mubr.msk.f32.gmra.mrb[14].mxu0 %vm48_vm0, %v19_v21  ;;  %761 = vmatmul.mubr.msk.f32.gmra.mrb[14].mxu1 %vm48_vm0, %v35_v22 }
  0x25   :  { %257 = vmatprep.mubr.f32.mxu0 %v932_v5  ;;  %353 = vmatprep.mubr.f32.mxu1 %v932_v5 }
  0x28   :  { %746 = vmatmul.mubr.msk.f32.gmra.mrb[16].mxu0 %vm48_vm0, %v20_v23  ;;  %762 = vmatmul.mubr.msk.f32.gmra.mrb[16].mxu1 %vm48_vm0, %v36_v24 }
  0x29   :  { %263 = vmatprep.mubr.f32.mxu0 %v932_v5  ;;  %359 = vmatprep.mubr.f32.mxu1 %v932_v5 }
  0x2c   :  { %747 = vmatmul.mubr.msk.f32.gmra.mrb[18].mxu0 %vm48_vm0, %v21_v25  ;;  %763 = vmatmul.mubr.msk.f32.gmra.mrb[18].mxu1 %vm48_vm0, %v37_v26 }
  0x2d   :  { %269 = vmatprep.mubr.f32.mxu0 %v932_v5  ;;  %365 = vmatprep.mubr.f32.mxu1 %v932_v5 }
  0x30   :  { %748 = vmatmul.mubr.msk.f32.gmra.mrb[20].mxu0 %vm48_vm0, %v22_v27  ;;  %764 = vmatmul.mubr.msk.f32.gmra.mrb[20].mxu1 %vm48_vm0, %v38_v28 }
  0x31   :  { %275 = vmatprep.mubr.f32.mxu0 %v932_v5  ;;  %371 = vmatprep.mubr.f32.mxu1 %v932_v5 }
  0x34   :  { %749 = vmatmul.mubr.msk.f32.gmra.mrb[22].mxu0 %vm48_vm0, %v23_v29  ;;  %765 = vmatmul.mubr.msk.f32.gmra.mrb[22].mxu1 %vm48_vm0, %v39_v30 }
  0x35   :  { %281 = vmatprep.mubr.f32.mxu0 %v932_v5  ;;  %377 = vmatprep.mubr.f32.mxu1 %v932_v5 }
  0x38   :  { %750 = vmatmul.mubr.msk.f32.gmra.mrb[24].mxu0 %vm48_vm0, %v24_v31  ;;  %766 = vmatmul.mubr.msk.f32.gmra.mrb[24].mxu1 %vm48_vm0, %v40_v32 }
  0x39   :  { %287 = vmatprep.mubr.f32.mxu0 %v932_v5  ;;  %383 = vmatprep.mubr.f32.mxu1 %v932_v5 }
  0x3c   :  { %751 = vmatmul.mubr.msk.f32.gmra.mrb[26].mxu0 %vm48_vm0, %v25_v33  ;;  %767 = vmatmul.mubr.msk.f32.gmra.mrb[26].mxu1 %vm48_vm0, %v41_v34 }
  0x3d   :  { %293 = vmatprep.mubr.f32.mxu0 %v932_v5  ;;  %389 = vmatprep.mubr.f32.mxu1 %v932_v5 }
  0x40   :  { %752 = vmatmul.mubr.msk.f32.gmra.mrb[28].mxu0 %vm48_vm0, %v26_v35  ;;  %768 = vmatmul.mubr.msk.f32.gmra.mrb[28].mxu1 %vm48_vm0, %v42_v36 }
  0x41   :  { %299 = vmatprep.mubr.f32.mxu0 %v932_v5  ;;  %395 = vmatprep.mubr.f32.mxu1 %v932_v5 }
  0x44   :  { %753 = vmatmul.mubr.msk.f32.gmra.mrb[30].mxu0 %vm48_vm0, %v27_v37  ;;  %769 = vmatmul.mubr.msk.f32.gmra.mrb[30].mxu1 %vm48_vm0, %v43_v38 }
  0xdb   :  { %v211_v39 = vpop.f32.mrb[0].mxu0  ;;  %v307_v40 = vpop.f32.mrb[0].mxu1 }
  0xdc   :  { %v402_v41 = vmul.f32 0.5, %v211_v39  ;;  %v434_v42 = vmul.f32 0.5, %v307_v40  ;;  %v213_v43 = vpop.f32.mrb[1].mxu0  ;;  %v309_v44 = vpop.f32.mrb[1].mxu1 }
  0xdd   :  { %v403_v45 = vmul.f32 0.5, %v213_v43  ;;  %v435_v46 = vmul.f32 0.5, %v309_v44 }
  0xde   :  { %780 = vtanh.f32 %v402_v41 }
  0xdf   :  { %782 = vtanh.f32 %v434_v42  ;;  %v217_v47 = vpop.f32.mrb[2].mxu0  ;;  %v313_v48 = vpop.f32.mrb[2].mxu1 }
  0xe0   :  { %784 = vtanh.f32 %v403_v45  ;;  %v404_v49 = vmul.f32 0.5, %v217_v47  ;;  %v436_v50 = vmul.f32 0.5, %v313_v48  ;;  %v219_v51 = vpop.f32.mrb[3].mxu0  ;;  %v315_v52 = vpop.f32.mrb[3].mxu1 }
  0xe1   :  { %786 = vtanh.f32 %v435_v46  ;;  %v405_v53 = vmul.f32 0.5, %v219_v51  ;;  %v437_v54 = vmul.f32 0.5, %v315_v52 }
  0xe2   :  { %788 = vtanh.f32 %v404_v49 }
  0xe3   :  { %790 = vtanh.f32 %v436_v50  ;;  %v223_v55 = vpop.f32.mrb[4].mxu0  ;;  %v319_v56 = vpop.f32.mrb[4].mxu1 }
  0xe4   :  { %792 = vtanh.f32 %v405_v53  ;;  %v406_v57 = vmul.f32 0.5, %v223_v55  ;;  %v438_v58 = vmul.f32 0.5, %v319_v56  ;;  %v225_v59 = vpop.f32.mrb[5].mxu0  ;;  %v321_v60 = vpop.f32.mrb[5].mxu1 }
  0xe5   :  { %794 = vtanh.f32 %v437_v54  ;;  %v407_v61 = vmul.f32 0.5, %v225_v59  ;;  %v439_v62 = vmul.f32 0.5, %v321_v60 }
  0xe6   :  { %796 = vtanh.f32 %v406_v57 }
  0xe7   :  { %798 = vtanh.f32 %v438_v58  ;;  %v229_v63 = vpop.f32.mrb[6].mxu0  ;;  %v325_v0 = vpop.f32.mrb[6].mxu1 }
  0xe8   :  { %v781_v1 = vpop.eup %780  ;;  %800 = vtanh.f32 %v407_v61  ;;  %v408_v2 = vmul.f32 0.5, %v229_v63  ;;  %v440_v3 = vmul.f32 0.5, %v325_v0  ;;  %v231_v4 = vpop.f32.mrb[7].mxu0 }
  0xe9   :  { %v327_v5 = vpop.f32.mrb[7].mxu1  ;;  %v783_v6 = vpop.eup %782  ;;  %v530_v7 = vadd.f32 1.0, %v781_v1  ;;  %802 = vtanh.f32 %v439_v62  ;;  %v409_v8 = vmul.f32 0.5, %v231_v4 }
  0xea   :  { %v441_v9 = vmul.f32 0.5, %v327_v5  ;;  %v785_v10 = vpop.eup %784  ;;  %v562_v11 = vadd.f32 1.0, %v783_v6  ;;  %804 = vtanh.f32 %v408_v2 }
  0xeb   :  { %v787_v12 = vpop.eup %786  ;;  %v594_v13 = vmul.f32 0.5, %v530_v7  ;;  %v531_v14 = vadd.f32 1.0, %v785_v10  ;;  %806 = vtanh.f32 %v440_v3  ;;  %v235_v15 = vpop.f32.mrb[8].mxu0 }
  0xec   :  { %v331_v16 = vpop.f32.mrb[8].mxu1  ;;  %v789_v17 = vpop.eup %788  ;;  %v626_v18 = vmul.f32 0.5, %v562_v11  ;;  %v563_v19 = vadd.f32 1.0, %v787_v12  ;;  %808 = vtanh.f32 %v409_v8  ;;  %v410_v20 = vmul.f32 0.5, %v235_v15 }
  0xed   :  { %v237_v21 = vpop.f32.mrb[9].mxu0  ;;  %v333_v22 = vpop.f32.mrb[9].mxu1  ;;  %658 = vst [vmem:[#allocation2] sm:$0xff] %v594_v13  ;;  %v595_v24 = vmul.f32 0.5, %v531_v14  ;;  %v532_v25 = vadd.f32 1.0, %v789_v17  ;;  %810 = vtanh.f32 %v441_v9  ;;  %v442_v26 = vmul.f32 0.5, %v331_v16 }
  0xee   :  { %v791_v23 = vpop.eup %790  ;;  %690 = vst [vmem:[#allocation2 + $0x100] sm:$0xff] %v626_v18  ;;  %v627_v28 = vmul.f32 0.5, %v563_v19  ;;  %812 = vtanh.f32 %v410_v20  ;;  %v411_v30 = vmul.f32 0.5, %v237_v21  ;;  %v443_v34 = vmul.f32 0.5, %v333_v22 }
  0xef   :  { %v793_v27 = vpop.eup %792  ;;  %v564_v29 = vadd.f32 1.0, %v791_v23  ;;  %659 = vst [vmem:[#allocation2 + $0x8] sm:$0xff] %v595_v24  ;;  %v596_v32 = vmul.f32 0.5, %v532_v25  ;;  %814 = vtanh.f32 %v442_v26  ;;  %v241_v35 = vpop.f32.mrb[10].mxu0 }
  0xf0   :  { %v795_v31 = vpop.eup %794  ;;  %v533_v33 = vadd.f32 1.0, %v793_v27  ;;  %v337_v36 = vpop.f32.mrb[10].mxu1  ;;  %691 = vst [vmem:[#allocation2 + $0x108] sm:$0xff] %v627_v28  ;;  %816 = vtanh.f32 %v411_v30  ;;  %v412_v40 = vmul.f32 0.5, %v241_v35 }
  0xf1   :  { %v797_v37 = vpop.eup %796  ;;  %v628_v38 = vmul.f32 0.5, %v564_v29  ;;  %v565_v39 = vadd.f32 1.0, %v795_v31  ;;  %v243_v41 = vpop.f32.mrb[11].mxu0  ;;  %660 = vst [vmem:[#allocation2 + $0x10] sm:$0xff] %v596_v32  ;;  %818 = vtanh.f32 %v443_v34  ;;  %v444_v46 = vmul.f32 0.5, %v337_v36 }
  0xf2   :  { %v339_v42 = vpop.f32.mrb[11].mxu1  ;;  %v799_v43 = vpop.eup %798  ;;  %v597_v44 = vmul.f32 0.5, %v533_v33  ;;  %v534_v45 = vadd.f32 1.0, %v797_v37  ;;  %820 = vtanh.f32 %v412_v40  ;;  %v413_v50 = vmul.f32 0.5, %v243_v41 }
  0xf3   :  { %v801_v47 = vpop.eup %800  ;;  %692 = vst [vmem:[#allocation2 + $0x110] sm:$0xff] %v628_v38  ;;  %v629_v48 = vmul.f32 0.5, %v565_v39  ;;  %v566_v49 = vadd.f32 1.0, %v799_v43  ;;  %822 = vtanh.f32 %v444_v46  ;;  %v445_v54 = vmul.f32 0.5, %v339_v42  ;;  %v247_v55 = vpop.f32.mrb[12].mxu0 }
  0xf4   :  { %v803_v51 = vpop.eup %802  ;;  %661 = vst [vmem:[#allocation2 + $0x18] sm:$0xff] %v597_v44  ;;  %v598_v52 = vmul.f32 0.5, %v534_v45  ;;  %v535_v53 = vadd.f32 1.0, %v801_v47  ;;  %v343_v56 = vpop.f32.mrb[12].mxu1  ;;  %824 = vtanh.f32 %v413_v50  ;;  %v414_v60 = vmul.f32 0.5, %v247_v55 }
  0xf5   :  { %v805_v57 = vpop.eup %804  ;;  %693 = vst [vmem:[#allocation2 + $0x118] sm:$0xff] %v629_v48  ;;  %v630_v58 = vmul.f32 0.5, %v566_v49  ;;  %v567_v59 = vadd.f32 1.0, %v803_v51  ;;  %v249_v61 = vpop.f32.mrb[13].mxu0  ;;  %826 = vtanh.f32 %v445_v54  ;;  %v446_v2 = vmul.f32 0.5, %v343_v56 }
  0xf6   :  { %v345_v62 = vpop.f32.mrb[13].mxu1  ;;  %v807_v63 = vpop.eup %806  ;;  %662 = vst [vmem:[#allocation2 + $0x20] sm:$0xff] %v598_v52  ;;  %v599_v0 = vmul.f32 0.5, %v535_v53  ;;  %v536_v1 = vadd.f32 1.0, %v805_v57  ;;  %828 = vtanh.f32 %v414_v60  ;;  %v415_v6 = vmul.f32 0.5, %v249_v61 }
  0xf7   :  { %v809_v3 = vpop.eup %808  ;;  %694 = vst [vmem:[#allocation2 + $0x120] sm:$0xff] %v630_v58  ;;  %v631_v4 = vmul.f32 0.5, %v567_v59  ;;  %v568_v5 = vadd.f32 1.0, %v807_v63  ;;  %830 = vtanh.f32 %v446_v2  ;;  %v447_v10 = vmul.f32 0.5, %v345_v62  ;;  %v253_v11 = vpop.f32.mrb[14].mxu0 }
  0xf8   :  { %v811_v7 = vpop.eup %810  ;;  %663 = vst [vmem:[#allocation2 + $0x28] sm:$0xff] %v599_v0  ;;  %v600_v8 = vmul.f32 0.5, %v536_v1  ;;  %v537_v9 = vadd.f32 1.0, %v809_v3  ;;  %v349_v12 = vpop.f32.mrb[14].mxu1  ;;  %832 = vtanh.f32 %v415_v6  ;;  %v416_v16 = vmul.f32 0.5, %v253_v11 }
  0xf9   :  { %v813_v13 = vpop.eup %812  ;;  %695 = vst [vmem:[#allocation2 + $0x128] sm:$0xff] %v631_v4  ;;  %v632_v14 = vmul.f32 0.5, %v568_v5  ;;  %v569_v15 = vadd.f32 1.0, %v811_v7  ;;  %v255_v17 = vpop.f32.mrb[15].mxu0  ;;  %834 = vtanh.f32 %v447_v10  ;;  %v448_v22 = vmul.f32 0.5, %v349_v12 }
  0xfa   :  { %v351_v18 = vpop.f32.mrb[15].mxu1  ;;  %v815_v19 = vpop.eup %814  ;;  %664 = vst [vmem:[#allocation2 + $0x30] sm:$0xff] %v600_v8  ;;  %v601_v20 = vmul.f32 0.5, %v537_v9  ;;  %v538_v21 = vadd.f32 1.0, %v813_v13  ;;  %836 = vtanh.f32 %v416_v16  ;;  %v417_v26 = vmul.f32 0.5, %v255_v17 }
  0xfb   :  { %v817_v23 = vpop.eup %816  ;;  %696 = vst [vmem:[#allocation2 + $0x130] sm:$0xff] %v632_v14  ;;  %v633_v24 = vmul.f32 0.5, %v569_v15  ;;  %v570_v25 = vadd.f32 1.0, %v815_v19  ;;  %838 = vtanh.f32 %v448_v22  ;;  %v449_v30 = vmul.f32 0.5, %v351_v18  ;;  %v259_v31 = vpop.f32.mrb[16].mxu0 }
  0xfc   :  { %v819_v27 = vpop.eup %818  ;;  %665 = vst [vmem:[#allocation2 + $0x38] sm:$0xff] %v601_v20  ;;  %v602_v28 = vmul.f32 0.5, %v538_v21  ;;  %v539_v29 = vadd.f32 1.0, %v817_v23  ;;  %v355_v32 = vpop.f32.mrb[16].mxu1  ;;  %840 = vtanh.f32 %v417_v26  ;;  %v418_v36 = vmul.f32 0.5, %v259_v31 }
  0xfd   :  { %v821_v33 = vpop.eup %820  ;;  %697 = vst [vmem:[#allocation2 + $0x138] sm:$0xff] %v633_v24  ;;  %v634_v34 = vmul.f32 0.5, %v570_v25  ;;  %v571_v35 = vadd.f32 1.0, %v819_v27  ;;  %v261_v37 = vpop.f32.mrb[17].mxu0  ;;  %842 = vtanh.f32 %v449_v30  ;;  %v450_v42 = vmul.f32 0.5, %v355_v32 }
  0xfe   :  { %v357_v38 = vpop.f32.mrb[17].mxu1  ;;  %v823_v39 = vpop.eup %822  ;;  %666 = vst [vmem:[#allocation2 + $0x40] sm:$0xff] %v602_v28  ;;  %v603_v40 = vmul.f32 0.5, %v539_v29  ;;  %v540_v41 = vadd.f32 1.0, %v821_v33  ;;  %844 = vtanh.f32 %v418_v36  ;;  %v419_v46 = vmul.f32 0.5, %v261_v37 }
  0xff   :  { %v825_v43 = vpop.eup %824  ;;  %698 = vst [vmem:[#allocation2 + $0x140] sm:$0xff] %v634_v34  ;;  %v635_v44 = vmul.f32 0.5, %v571_v35  ;;  %v572_v45 = vadd.f32 1.0, %v823_v39  ;;  %846 = vtanh.f32 %v450_v42  ;;  %v451_v50 = vmul.f32 0.5, %v357_v38  ;;  %v265_v51 = vpop.f32.mrb[18].mxu0 }
 0x100   :  { %v827_v47 = vpop.eup %826  ;;  %667 = vst [vmem:[#allocation2 + $0x48] sm:$0xff] %v603_v40  ;;  %v604_v48 = vmul.f32 0.5, %v540_v41  ;;  %v541_v49 = vadd.f32 1.0, %v825_v43  ;;  %v361_v52 = vpop.f32.mrb[18].mxu1  ;;  %848 = vtanh.f32 %v419_v46  ;;  %v420_v56 = vmul.f32 0.5, %v265_v51 }
 0x101   :  { %v829_v53 = vpop.eup %828  ;;  %699 = vst [vmem:[#allocation2 + $0x148] sm:$0xff] %v635_v44  ;;  %v636_v54 = vmul.f32 0.5, %v572_v45  ;;  %v573_v55 = vadd.f32 1.0, %v827_v47  ;;  %v267_v57 = vpop.f32.mrb[19].mxu0  ;;  %850 = vtanh.f32 %v451_v50  ;;  %v452_v62 = vmul.f32 0.5, %v361_v52 }
 0x102   :  { %v363_v58 = vpop.f32.mrb[19].mxu1  ;;  %v831_v59 = vpop.eup %830  ;;  %668 = vst [vmem:[#allocation2 + $0x50] sm:$0xff] %v604_v48  ;;  %v605_v60 = vmul.f32 0.5, %v541_v49  ;;  %v542_v61 = vadd.f32 1.0, %v829_v53  ;;  %852 = vtanh.f32 %v420_v56  ;;  %v421_v2 = vmul.f32 0.5, %v267_v57 }
 0x103   :  { %v833_v63 = vpop.eup %832  ;;  %700 = vst [vmem:[#allocation2 + $0x150] sm:$0xff] %v636_v54  ;;  %v637_v0 = vmul.f32 0.5, %v573_v55  ;;  %v574_v1 = vadd.f32 1.0, %v831_v59  ;;  %854 = vtanh.f32 %v452_v62  ;;  %v453_v6 = vmul.f32 0.5, %v363_v58  ;;  %v271_v7 = vpop.f32.mrb[20].mxu0 }
 0x104   :  { %v835_v3 = vpop.eup %834  ;;  %669 = vst [vmem:[#allocation2 + $0x58] sm:$0xff] %v605_v60  ;;  %v606_v4 = vmul.f32 0.5, %v542_v61  ;;  %v543_v5 = vadd.f32 1.0, %v833_v63  ;;  %v367_v8 = vpop.f32.mrb[20].mxu1  ;;  %856 = vtanh.f32 %v421_v2  ;;  %v422_v12 = vmul.f32 0.5, %v271_v7 }
 0x105   :  { %v837_v9 = vpop.eup %836  ;;  %701 = vst [vmem:[#allocation2 + $0x158] sm:$0xff] %v637_v0  ;;  %v638_v10 = vmul.f32 0.5, %v574_v1  ;;  %v575_v11 = vadd.f32 1.0, %v835_v3  ;;  %v273_v13 = vpop.f32.mrb[21].mxu0  ;;  %858 = vtanh.f32 %v453_v6  ;;  %v454_v18 = vmul.f32 0.5, %v367_v8 }
 0x106   :  { %v369_v14 = vpop.f32.mrb[21].mxu1  ;;  %v839_v15 = vpop.eup %838  ;;  %670 = vst [vmem:[#allocation2 + $0x60] sm:$0xff] %v606_v4  ;;  %v607_v16 = vmul.f32 0.5, %v543_v5  ;;  %v544_v17 = vadd.f32 1.0, %v837_v9  ;;  %860 = vtanh.f32 %v422_v12  ;;  %v423_v22 = vmul.f32 0.5, %v273_v13 }
 0x107   :  { %v841_v19 = vpop.eup %840  ;;  %702 = vst [vmem:[#allocation2 + $0x160] sm:$0xff] %v638_v10  ;;  %v639_v20 = vmul.f32 0.5, %v575_v11  ;;  %v576_v21 = vadd.f32 1.0, %v839_v15  ;;  %862 = vtanh.f32 %v454_v18  ;;  %v455_v26 = vmul.f32 0.5, %v369_v14  ;;  %v277_v27 = vpop.f32.mrb[22].mxu0 }
 0x108   :  { %v843_v23 = vpop.eup %842  ;;  %671 = vst [vmem:[#allocation2 + $0x68] sm:$0xff] %v607_v16  ;;  %v608_v24 = vmul.f32 0.5, %v544_v17  ;;  %v545_v25 = vadd.f32 1.0, %v841_v19  ;;  %v373_v28 = vpop.f32.mrb[22].mxu1  ;;  %864 = vtanh.f32 %v423_v22  ;;  %v424_v32 = vmul.f32 0.5, %v277_v27 }
 0x109   :  { %v845_v29 = vpop.eup %844  ;;  %703 = vst [vmem:[#allocation2 + $0x168] sm:$0xff] %v639_v20  ;;  %v640_v30 = vmul.f32 0.5, %v576_v21  ;;  %v577_v31 = vadd.f32 1.0, %v843_v23  ;;  %v279_v33 = vpop.f32.mrb[23].mxu0  ;;  %866 = vtanh.f32 %v455_v26  ;;  %v456_v38 = vmul.f32 0.5, %v373_v28 }
 0x10a   :  { %v375_v34 = vpop.f32.mrb[23].mxu1  ;;  %v847_v35 = vpop.eup %846  ;;  %672 = vst [vmem:[#allocation2 + $0x70] sm:$0xff] %v608_v24  ;;  %v609_v36 = vmul.f32 0.5, %v545_v25  ;;  %v546_v37 = vadd.f32 1.0, %v845_v29  ;;  %868 = vtanh.f32 %v424_v32  ;;  %v425_v42 = vmul.f32 0.5, %v279_v33 }
 0x10b   :  { %v849_v39 = vpop.eup %848  ;;  %704 = vst [vmem:[#allocation2 + $0x170] sm:$0xff] %v640_v30  ;;  %v641_v40 = vmul.f32 0.5, %v577_v31  ;;  %v578_v41 = vadd.f32 1.0, %v847_v35  ;;  %870 = vtanh.f32 %v456_v38  ;;  %v457_v46 = vmul.f32 0.5, %v375_v34  ;;  %v283_v47 = vpop.f32.mrb[24].mxu0 }
 0x10c   :  { %v851_v43 = vpop.eup %850  ;;  %673 = vst [vmem:[#allocation2 + $0x78] sm:$0xff] %v609_v36  ;;  %v610_v44 = vmul.f32 0.5, %v546_v37  ;;  %v547_v45 = vadd.f32 1.0, %v849_v39  ;;  %v379_v48 = vpop.f32.mrb[24].mxu1  ;;  %872 = vtanh.f32 %v425_v42  ;;  %v426_v52 = vmul.f32 0.5, %v283_v47 }
 0x10d   :  { %v853_v49 = vpop.eup %852  ;;  %705 = vst [vmem:[#allocation2 + $0x178] sm:$0xff] %v641_v40  ;;  %v642_v50 = vmul.f32 0.5, %v578_v41  ;;  %v579_v51 = vadd.f32 1.0, %v851_v43  ;;  %v285_v53 = vpop.f32.mrb[25].mxu0  ;;  %874 = vtanh.f32 %v457_v46  ;;  %v458_v58 = vmul.f32 0.5, %v379_v48 }
 0x10e   :  { %v381_v54 = vpop.f32.mrb[25].mxu1  ;;  %v855_v55 = vpop.eup %854  ;;  %674 = vst [vmem:[#allocation2 + $0x80] sm:$0xff] %v610_v44  ;;  %v611_v56 = vmul.f32 0.5, %v547_v45  ;;  %v548_v57 = vadd.f32 1.0, %v853_v49  ;;  %876 = vtanh.f32 %v426_v52  ;;  %v427_v62 = vmul.f32 0.5, %v285_v53 }
 0x10f   :  { %v857_v59 = vpop.eup %856  ;;  %706 = vst [vmem:[#allocation2 + $0x180] sm:$0xff] %v642_v50  ;;  %v643_v60 = vmul.f32 0.5, %v579_v51  ;;  %v580_v61 = vadd.f32 1.0, %v855_v55  ;;  %878 = vtanh.f32 %v458_v58  ;;  %v459_v2 = vmul.f32 0.5, %v381_v54  ;;  %v289_v3 = vpop.f32.mrb[26].mxu0 }
 0x110   :  { %v859_v63 = vpop.eup %858  ;;  %675 = vst [vmem:[#allocation2 + $0x88] sm:$0xff] %v611_v56  ;;  %v612_v0 = vmul.f32 0.5, %v548_v57  ;;  %v549_v1 = vadd.f32 1.0, %v857_v59  ;;  %v385_v4 = vpop.f32.mrb[26].mxu1  ;;  %880 = vtanh.f32 %v427_v62  ;;  %v428_v8 = vmul.f32 0.5, %v289_v3 }
 0x111   :  { %v861_v5 = vpop.eup %860  ;;  %707 = vst [vmem:[#allocation2 + $0x188] sm:$0xff] %v643_v60  ;;  %v644_v6 = vmul.f32 0.5, %v580_v61  ;;  %v581_v7 = vadd.f32 1.0, %v859_v63  ;;  %v291_v9 = vpop.f32.mrb[27].mxu0  ;;  %882 = vtanh.f32 %v459_v2  ;;  %v460_v14 = vmul.f32 0.5, %v385_v4 }
 0x112   :  { %v387_v10 = vpop.f32.mrb[27].mxu1  ;;  %v863_v11 = vpop.eup %862  ;;  %676 = vst [vmem:[#allocation2 + $0x90] sm:$0xff] %v612_v0  ;;  %v613_v12 = vmul.f32 0.5, %v549_v1  ;;  %v550_v13 = vadd.f32 1.0, %v861_v5  ;;  %884 = vtanh.f32 %v428_v8  ;;  %v429_v18 = vmul.f32 0.5, %v291_v9 }
 0x113   :  { %v865_v15 = vpop.eup %864  ;;  %708 = vst [vmem:[#allocation2 + $0x190] sm:$0xff] %v644_v6  ;;  %v645_v16 = vmul.f32 0.5, %v581_v7  ;;  %v582_v17 = vadd.f32 1.0, %v863_v11  ;;  %886 = vtanh.f32 %v460_v14  ;;  %v461_v22 = vmul.f32 0.5, %v387_v10  ;;  %v295_v23 = vpop.f32.mrb[28].mxu0 }
 0x114   :  { %v867_v19 = vpop.eup %866  ;;  %677 = vst [vmem:[#allocation2 + $0x98] sm:$0xff] %v613_v12  ;;  %v614_v20 = vmul.f32 0.5, %v550_v13  ;;  %v551_v21 = vadd.f32 1.0, %v865_v15  ;;  %v391_v24 = vpop.f32.mrb[28].mxu1  ;;  %888 = vtanh.f32 %v429_v18  ;;  %v430_v28 = vmul.f32 0.5, %v295_v23 }
 0x115   :  { %v869_v25 = vpop.eup %868  ;;  %709 = vst [vmem:[#allocation2 + $0x198] sm:$0xff] %v645_v16  ;;  %v646_v26 = vmul.f32 0.5, %v582_v17  ;;  %v583_v27 = vadd.f32 1.0, %v867_v19  ;;  %v297_v29 = vpop.f32.mrb[29].mxu0  ;;  %890 = vtanh.f32 %v461_v22  ;;  %v462_v34 = vmul.f32 0.5, %v391_v24 }
 0x116   :  { %v393_v30 = vpop.f32.mrb[29].mxu1  ;;  %v871_v31 = vpop.eup %870  ;;  %678 = vst [vmem:[#allocation2 + $0xa0] sm:$0xff] %v614_v20  ;;  %v615_v32 = vmul.f32 0.5, %v551_v21  ;;  %v552_v33 = vadd.f32 1.0, %v869_v25  ;;  %892 = vtanh.f32 %v430_v28  ;;  %v431_v38 = vmul.f32 0.5, %v297_v29 }
 0x117   :  { %v873_v35 = vpop.eup %872  ;;  %710 = vst [vmem:[#allocation2 + $0x1a0] sm:$0xff] %v646_v26  ;;  %v647_v36 = vmul.f32 0.5, %v583_v27  ;;  %v584_v37 = vadd.f32 1.0, %v871_v31  ;;  %894 = vtanh.f32 %v462_v34  ;;  %v463_v42 = vmul.f32 0.5, %v393_v30  ;;  %v301_v43 = vpop.f32.mrb[30].mxu0 }
 0x118   :  { %v875_v39 = vpop.eup %874  ;;  %679 = vst [vmem:[#allocation2 + $0xa8] sm:$0xff] %v615_v32  ;;  %v616_v40 = vmul.f32 0.5, %v552_v33  ;;  %v553_v41 = vadd.f32 1.0, %v873_v35  ;;  %v397_v44 = vpop.f32.mrb[30].mxu1  ;;  %896 = vtanh.f32 %v431_v38  ;;  %v432_v48 = vmul.f32 0.5, %v301_v43 }
 0x119   :  { %v877_v45 = vpop.eup %876  ;;  %711 = vst [vmem:[#allocation2 + $0x1a8] sm:$0xff] %v647_v36  ;;  %v648_v46 = vmul.f32 0.5, %v584_v37  ;;  %v585_v47 = vadd.f32 1.0, %v875_v39  ;;  %v303_v49 = vpop.f32.mrb[31].mxu0  ;;  %898 = vtanh.f32 %v463_v42  ;;  %v464_v54 = vmul.f32 0.5, %v397_v44 }
 0x11a   :  { %v399_v50 = vpop.f32.mrb[31].mxu1  ;;  %v879_v51 = vpop.eup %878  ;;  %680 = vst [vmem:[#allocation2 + $0xb0] sm:$0xff] %v616_v40  ;;  %v617_v52 = vmul.f32 0.5, %v553_v41  ;;  %v554_v53 = vadd.f32 1.0, %v877_v45  ;;  %900 = vtanh.f32 %v432_v48  ;;  %v433_v58 = vmul.f32 0.5, %v303_v49 }
 0x11b   :  { %v881_v55 = vpop.eup %880  ;;  %712 = vst [vmem:[#allocation2 + $0x1b0] sm:$0xff] %v648_v46  ;;  %v649_v56 = vmul.f32 0.5, %v585_v47  ;;  %v586_v57 = vadd.f32 1.0, %v879_v51  ;;  %902 = vtanh.f32 %v464_v54  ;;  %v465_v62 = vmul.f32 0.5, %v399_v50 }
 0x11c   :  { %v883_v59 = vpop.eup %882  ;;  %681 = vst [vmem:[#allocation2 + $0xb8] sm:$0xff] %v617_v52  ;;  %v618_v60 = vmul.f32 0.5, %v554_v53  ;;  %v555_v61 = vadd.f32 1.0, %v881_v55  ;;  %904 = vtanh.f32 %v433_v58 }
 0x11d   :  { %v885_v63 = vpop.eup %884  ;;  %713 = vst [vmem:[#allocation2 + $0x1b8] sm:$0xff] %v649_v56  ;;  %v650_v0 = vmul.f32 0.5, %v586_v57  ;;  %v587_v1 = vadd.f32 1.0, %v883_v59  ;;  %906 = vtanh.f32 %v465_v62 }
 0x11e   :  { %v887_v2 = vpop.eup %886  ;;  %682 = vst [vmem:[#allocation2 + $0xc0] sm:$0xff] %v618_v60  ;;  %v619_v3 = vmul.f32 0.5, %v555_v61  ;;  %v556_v4 = vadd.f32 1.0, %v885_v63 }
 0x11f   :  { %v889_v5 = vpop.eup %888  ;;  %714 = vst [vmem:[#allocation2 + $0x1c0] sm:$0xff] %v650_v0  ;;  %v651_v6 = vmul.f32 0.5, %v587_v1  ;;  %v588_v7 = vadd.f32 1.0, %v887_v2 }
 0x120   :  { %v891_v8 = vpop.eup %890  ;;  %683 = vst [vmem:[#allocation2 + $0xc8] sm:$0xff] %v619_v3  ;;  %v620_v9 = vmul.f32 0.5, %v556_v4  ;;  %v557_v10 = vadd.f32 1.0, %v889_v5 }
 0x121   :  { %v893_v11 = vpop.eup %892  ;;  %715 = vst [vmem:[#allocation2 + $0x1c8] sm:$0xff] %v651_v6  ;;  %v652_v12 = vmul.f32 0.5, %v588_v7  ;;  %v589_v13 = vadd.f32 1.0, %v891_v8 }
 0x122   :  { %v895_v14 = vpop.eup %894  ;;  %684 = vst [vmem:[#allocation2 + $0xd0] sm:$0xff] %v620_v9  ;;  %v621_v15 = vmul.f32 0.5, %v557_v10  ;;  %v558_v16 = vadd.f32 1.0, %v893_v11 }
 0x123   :  { %v897_v17 = vpop.eup %896  ;;  %716 = vst [vmem:[#allocation2 + $0x1d0] sm:$0xff] %v652_v12  ;;  %v653_v18 = vmul.f32 0.5, %v589_v13  ;;  %v590_v19 = vadd.f32 1.0, %v895_v14 }
 0x124   :  { %v899_v20 = vpop.eup %898  ;;  %685 = vst [vmem:[#allocation2 + $0xd8] sm:$0xff] %v621_v15  ;;  %v622_v21 = vmul.f32 0.5, %v558_v16  ;;  %v559_v22 = vadd.f32 1.0, %v897_v17 }
 0x125   :  { %v901_v23 = vpop.eup %900  ;;  %717 = vst [vmem:[#allocation2 + $0x1d8] sm:$0xff] %v653_v18  ;;  %v654_v24 = vmul.f32 0.5, %v590_v19  ;;  %v591_v25 = vadd.f32 1.0, %v899_v20 }
 0x126   :  { %v903_v26 = vpop.eup %902  ;;  %686 = vst [vmem:[#allocation2 + $0xe0] sm:$0xff] %v622_v21  ;;  %v623_v27 = vmul.f32 0.5, %v559_v22  ;;  %v560_v28 = vadd.f32 1.0, %v901_v23 }
 0x127   :  { %v905_v29 = vpop.eup %904  ;;  %718 = vst [vmem:[#allocation2 + $0x1e0] sm:$0xff] %v654_v24  ;;  %v655_v30 = vmul.f32 0.5, %v591_v25  ;;  %v592_v31 = vadd.f32 1.0, %v903_v26 }
 0x128   :  { %v907_v32 = vpop.eup %906  ;;  %687 = vst [vmem:[#allocation2 + $0xe8] sm:$0xff] %v623_v27  ;;  %v624_v33 = vmul.f32 0.5, %v560_v28  ;;  %v561_v34 = vadd.f32 1.0, %v905_v29 }
 0x129   :  { %719 = vst [vmem:[#allocation2 + $0x1e8] sm:$0xff] %v655_v30  ;;  %v656_v35 = vmul.f32 0.5, %v592_v31  ;;  %v593_v36 = vadd.f32 1.0, %v907_v32 }
 0x12a   :  { %688 = vst [vmem:[#allocation2 + $0xf0] sm:$0xff] %v624_v33  ;;  %v625_v37 = vmul.f32 0.5, %v561_v34 }
 0x12b   :  { %720 = vst [vmem:[#allocation2 + $0x1f0] sm:$0xff] %v656_v35  ;;  %v657_v38 = vmul.f32 0.5, %v593_v36 }
 0x12c   :  { %689 = vst [vmem:[#allocation2 + $0xf8] sm:$0xff] %v625_v37 }
 0x12d   :  { %721 = vst [vmem:[#allocation2 + $0x1f8] sm:$0xff] %v657_v38 }
 0x12e   :  { %919 = shalt.err (!%p916_p4)
}
 0x12f   :  { %s920_s26 = scalar_lea.hbm %s1137_s2, 8192 }
 0x130   :  { %p921_p5 = scmp.ne.s32.totalorder %s1137_s2, %s920_s26  ;;  %p924_p6 = scmp.lt.u32.totalorder %s920_s26, %s1137_s2 }
 0x132   :  { %p926_p7 = pnand %p924_p6, %p921_p5 }
 0x134   :  { %929 = shalt.err (!%p926_p7)
}
 0x135   :  { %s934_s3 = smov 256   ;;  %s935_s4 = smov 16  }
 0x136   :  { %733 = dma.vmem_to_hbm [thread:$0]  %s728_s22, 8192, %s1137_s2, [#allocation3], %s934_s3, %s934_s3, %s935_s4  }
 0x137   :  { %930 = dma.done.wait [#allocation3], 8192  }
 0x138   :  { %931 = vsyncadd [#allocation3], 4294959104 }
 0x139   :  { %737 = vsyncpa [#allocation3], 1 }

// kernel: vgae_forward.2
= control target key start
LH: loop header
LB: loop body
LE: loop exit
PB: predicated region body
PF: predicated region fallthrough
CT: control target
= control target key end

     0   :  { %vm53_vm0 = vcmask 261120   ;;  %vm1020_vm1 = vcmask 130048   ;;  %s1980_s1 = inlined_call_operand.vmem [shape: f32[32,32], index: 1, kind: input, shape index: {}]   ;;  %s1981_s0 = inlined_call_operand.vmem [shape: f32[256,32], index: 0, kind: input, shape index: {}]   ;;  %s1982_s2 = inlined_call_operand.vmem [shape: f32[32,32], index: 2, kind: input, shape index: {}]   ;;  %s1983_s3 = inlined_call_operand.vmem [shape: f32[256,16], index: 3, kind: input, shape index: {}]   ;;  %s1984_s4 = inlined_call_operand.vmem [shape: f32[256,16], index: 4, kind: output, shape index: {}]  }
   0x1   :  { %v49_v0 = vld [vmem:[%s1980_s1] sm:$0xff]  ;;  %v50_v1 = vld [vmem:[%s1980_s1 + $0x8] sm:$0xff]  ;;  %v51_v2 = vld [vmem:[%s1980_s1 + $0x10] sm:$0xff] }
   0x2   :  { %v1305_v3 = vpack.c.bf16 %v50_v1, %v49_v0  ;;  %v52_v4 = vld [vmem:[%s1980_s1 + $0x18] sm:$0xff]  ;;  %v17_v5 = vld [vmem:[%s1981_s0] sm:$0xff]  ;;  %v18_v7 = vld [vmem:[%s1981_s0 + $0x8] sm:$0xff] }
   0x3   :  { %v1309_v6 = vpack.c.bf16 %v52_v4, %v51_v2  ;;  %1201 = vmatprep.mubr.msk.f32.mxu0 %vm53_vm0, %v17_v5  ;;  %v19_v8 = vld [vmem:[%s1981_s0 + $0x10] sm:$0xff]  ;;  %v20_v9 = vld [vmem:[%s1981_s0 + $0x18] sm:$0xff]  ;;  %v407_v10 = vld [vmem:[%s1982_s2] sm:$0xff] }
   0x4   :  { %1306 = vmatprep.subr.bf16.mxu0 %v1305_v3  ;;  %v408_v11 = vld [vmem:[%s1982_s2 + $0x8] sm:$0xff]  ;;  %v21_v12 = vld [vmem:[%s1981_s0 + $0x20] sm:$0xff]  ;;  %v23_v15 = vld [vmem:[%s1981_s0 + $0x30] sm:$0xff] }
   0x5   :  { %1308 = vmatpush3.bf16.msra.mxu0 %v1305_v3  ;;  %v1313_v13 = vpack.c.bf16 %v408_v11, %v407_v10  ;;  %v22_v14 = vld [vmem:[%s1981_s0 + $0x28] sm:$0xff]  ;;  %v24_v16 = vld [vmem:[%s1981_s0 + $0x38] sm:$0xff]  ;;  %v25_v17 = vld [vmem:[%s1981_s0 + $0x40] sm:$0xff] }
   0x6   :  { %1310 = vmatprep.subr.bf16.mxu0 %v1309_v6  ;;  %v26_v18 = vld [vmem:[%s1981_s0 + $0x48] sm:$0xff]  ;;  %v27_v19 = vld [vmem:[%s1981_s0 + $0x50] sm:$0xff]  ;;  %v28_v20 = vld [vmem:[%s1981_s0 + $0x58] sm:$0xff] }
   0x7   :  { %1314 = vmatprep.subr.bf16.mxu1 %v1313_v13  ;;  %v29_v21 = vld [vmem:[%s1981_s0 + $0x60] sm:$0xff]  ;;  %v30_v22 = vld [vmem:[%s1981_s0 + $0x68] sm:$0xff]  ;;  %v31_v23 = vld [vmem:[%s1981_s0 + $0x70] sm:$0xff] }
   0x8   :  { %1316 = vmatpush3.bf16.msra.mxu1 %v1313_v13  ;;  %v32_v24 = vld [vmem:[%s1981_s0 + $0x78] sm:$0xff]  ;;  %v33_v25 = vld [vmem:[%s1981_s0 + $0x80] sm:$0xff]  ;;  %v34_v26 = vld [vmem:[%s1981_s0 + $0x88] sm:$0xff] }
   0x9   :  { %1312 = vmatpush3.bf16.msra.mxu0 %v1309_v6  ;;  %v35_v27 = vld [vmem:[%s1981_s0 + $0x90] sm:$0xff]  ;;  %v36_v28 = vld [vmem:[%s1981_s0 + $0x98] sm:$0xff]  ;;  %v37_v29 = vld [vmem:[%s1981_s0 + $0xa0] sm:$0xff] }
   0xa   :  { %v38_v30 = vld [vmem:[%s1981_s0 + $0xa8] sm:$0xff]  ;;  %v39_v31 = vld [vmem:[%s1981_s0 + $0xb0] sm:$0xff]  ;;  %v40_v32 = vld [vmem:[%s1981_s0 + $0xb8] sm:$0xff] }
   0xb   :  { %v41_v33 = vld [vmem:[%s1981_s0 + $0xc0] sm:$0xff]  ;;  %v42_v34 = vld [vmem:[%s1981_s0 + $0xc8] sm:$0xff]  ;;  %v43_v35 = vld [vmem:[%s1981_s0 + $0xd0] sm:$0xff] }
   0xc   :  { %1202 = vmatmul.mubr.msk.f32.vlgmr.msra.gmra.mrb[0].mxu0 %vm53_vm0, %v18_v7  ;;  %v44_v36 = vld [vmem:[%s1981_s0 + $0xd8] sm:$0xff]  ;;  %v45_v37 = vld [vmem:[%s1981_s0 + $0xe0] sm:$0xff]  ;;  %v46_v38 = vld [vmem:[%s1981_s0 + $0xe8] sm:$0xff] }
   0xd   :  { %1204 = vmatprep.mubr.msk.f32.mxu0 %vm53_vm0, %v19_v8  ;;  %v47_v39 = vld [vmem:[%s1981_s0 + $0xf0] sm:$0xff]  ;;  %v48_v40 = vld [vmem:[%s1981_s0 + $0xf8] sm:$0xff]  ;;  %s1386_s0 = smov 112  }
   0xe   :  { %v409_v41 = vld [vmem:[%s1982_s2 + $0x10] sm:$0xff]  ;;  %v410_v42 = vld [vmem:[%s1982_s2 + $0x18] sm:$0xff] }
   0xf   :  { %v1317_v43 = vpack.c.bf16 %v410_v42, %v409_v41 }
  0x10   :  { %1205 = vmatmul.mubr.msk.f32.gmra.mrb[2].mxu0 %vm53_vm0, %v20_v9 }
  0x11   :  { %1207 = vmatprep.mubr.msk.f32.mxu0 %vm53_vm0, %v21_v12  ;;  %1318 = vmatprep.subr.bf16.mxu1 %v1317_v43 }
  0x12   :  { %1320 = vmatpush3.bf16.msra.mxu1 %v1317_v43 }
  0x14   :  { %1208 = vmatmul.mubr.msk.f32.gmra.mrb[4].mxu0 %vm53_vm0, %v22_v14 }
  0x15   :  { %1210 = vmatprep.mubr.msk.f32.mxu0 %vm53_vm0, %v23_v15 }
  0x18   :  { %1211 = vmatmul.mubr.msk.f32.gmra.mrb[6].mxu0 %vm53_vm0, %v24_v16 }
  0x19   :  { %1213 = vmatprep.mubr.msk.f32.mxu0 %vm53_vm0, %v25_v17 }
  0x1c   :  { %1214 = vmatmul.mubr.msk.f32.gmra.mrb[8].mxu0 %vm53_vm0, %v26_v18 }
  0x1d   :  { %1216 = vmatprep.mubr.msk.f32.mxu0 %vm53_vm0, %v27_v19 }
  0x20   :  { %1217 = vmatmul.mubr.msk.f32.gmra.mrb[10].mxu0 %vm53_vm0, %v28_v20 }
  0x21   :  { %1219 = vmatprep.mubr.msk.f32.mxu0 %vm53_vm0, %v29_v21 }
  0x24   :  { %1220 = vmatmul.mubr.msk.f32.gmra.mrb[12].mxu0 %vm53_vm0, %v30_v22 }
  0x25   :  { %1222 = vmatprep.mubr.msk.f32.mxu0 %vm53_vm0, %v31_v23 }
  0x28   :  { %1223 = vmatmul.mubr.msk.f32.gmra.mrb[14].mxu0 %vm53_vm0, %v32_v24 }
  0x29   :  { %1225 = vmatprep.mubr.msk.f32.mxu0 %vm53_vm0, %v33_v25 }
  0x2c   :  { %1226 = vmatmul.mubr.msk.f32.gmra.mrb[16].mxu0 %vm53_vm0, %v34_v26 }
  0x2d   :  { %1228 = vmatprep.mubr.msk.f32.mxu0 %vm53_vm0, %v35_v27 }
  0x30   :  { %1229 = vmatmul.mubr.msk.f32.gmra.mrb[18].mxu0 %vm53_vm0, %v36_v28 }
  0x31   :  { %1231 = vmatprep.mubr.msk.f32.mxu0 %vm53_vm0, %v37_v29 }
  0x34   :  { %1232 = vmatmul.mubr.msk.f32.gmra.mrb[20].mxu0 %vm53_vm0, %v38_v30 }
  0x35   :  { %1234 = vmatprep.mubr.msk.f32.mxu0 %vm53_vm0, %v39_v31 }
  0x38   :  { %1235 = vmatmul.mubr.msk.f32.gmra.mrb[22].mxu0 %vm53_vm0, %v40_v32 }
  0x39   :  { %1237 = vmatprep.mubr.msk.f32.mxu0 %vm53_vm0, %v41_v33 }
  0x3c   :  { %1238 = vmatmul.mubr.msk.f32.gmra.mrb[24].mxu0 %vm53_vm0, %v42_v34 }
  0x3d   :  { %1240 = vmatprep.mubr.msk.f32.mxu0 %vm53_vm0, %v43_v35 }
  0x40   :  { %1241 = vmatmul.mubr.msk.f32.gmra.mrb[26].mxu0 %vm53_vm0, %v44_v36 }
  0x41   :  { %1243 = vmatprep.mubr.msk.f32.mxu0 %vm53_vm0, %v45_v37 }
  0x44   :  { %1244 = vmatmul.mubr.msk.f32.gmra.mrb[28].mxu0 %vm53_vm0, %v46_v38 }
  0x45   :  { %1246 = vmatprep.mubr.msk.f32.mxu0 %vm53_vm0, %v47_v39 }
  0x48   :  { %1247 = vmatmul.mubr.msk.f32.gmra.mrb[30].mxu0 %vm53_vm0, %v48_v40 }
  0xdf   :  { %v1203_v44 = vpop.f32.mrb[0].mxu0 }
  0xe0   :  { %v216_v45 = vpop.f32.mrb[1].mxu0  ;;  %v376_v47 = vmax.f32 %v1203_v44, 0.0 }
  0xe1   :  { %v375_v46 = vmax.f32 %v216_v45, 0.0 }
  0xe3   :  { %v1206_v48 = vpop.f32.mrb[2].mxu0  ;;  %1257 = vmatprep.mubr.msk.f32.mxu1 %vm53_vm0, %v375_v46 }
  0xe4   :  { %v226_v49 = vpop.f32.mrb[3].mxu0  ;;  %1258 = vmatmul.mubr.msk.f32.vlgmr.msra.gmra.mrb[0].mxu1 %vm53_vm0, %v376_v47  ;;  %v378_v51 = vmax.f32 %v1206_v48, 0.0 }
  0xe5   :  { %v377_v50 = vmax.f32 %v226_v49, 0.0 }
  0xe7   :  { %v1209_v52 = vpop.f32.mrb[4].mxu0  ;;  %1260 = vmatprep.mubr.msk.f32.mxu1 %vm53_vm0, %v377_v50 }
  0xe8   :  { %v380_v53 = vmax.f32 %v1209_v52, 0.0  ;;  %v236_v54 = vpop.f32.mrb[5].mxu0  ;;  %1261 = vmatmul.mubr.msk.f32.gmra.mrb[2].mxu1 %vm53_vm0, %v378_v51 }
  0xe9   :  { %v379_v55 = vmax.f32 %v236_v54, 0.0 }
  0xeb   :  { %v1212_v56 = vpop.f32.mrb[6].mxu0  ;;  %1263 = vmatprep.mubr.msk.f32.mxu1 %vm53_vm0, %v379_v55 }
  0xec   :  { %v382_v57 = vmax.f32 %v1212_v56, 0.0  ;;  %v246_v58 = vpop.f32.mrb[7].mxu0  ;;  %1264 = vmatmul.mubr.msk.f32.gmra.mrb[4].mxu1 %vm53_vm0, %v380_v53 }
  0xed   :  { %v381_v59 = vmax.f32 %v246_v58, 0.0 }
  0xef   :  { %v1215_v60 = vpop.f32.mrb[8].mxu0  ;;  %1266 = vmatprep.mubr.msk.f32.mxu1 %vm53_vm0, %v381_v59 }
  0xf0   :  { %v384_v61 = vmax.f32 %v1215_v60, 0.0  ;;  %v256_v62 = vpop.f32.mrb[9].mxu0  ;;  %1267 = vmatmul.mubr.msk.f32.gmra.mrb[6].mxu1 %vm53_vm0, %v382_v57 }
  0xf1   :  { %v383_v63 = vmax.f32 %v256_v62, 0.0 }
  0xf3   :  { %v1218_v0 = vpop.f32.mrb[10].mxu0  ;;  %1269 = vmatprep.mubr.msk.f32.mxu1 %vm53_vm0, %v383_v63 }
  0xf4   :  { %v386_v1 = vmax.f32 %v1218_v0, 0.0  ;;  %v266_v2 = vpop.f32.mrb[11].mxu0  ;;  %1270 = vmatmul.mubr.msk.f32.gmra.mrb[8].mxu1 %vm53_vm0, %v384_v61 }
  0xf5   :  { %v385_v3 = vmax.f32 %v266_v2, 0.0 }
  0xf7   :  { %v1221_v4 = vpop.f32.mrb[12].mxu0  ;;  %1272 = vmatprep.mubr.msk.f32.mxu1 %vm53_vm0, %v385_v3 }
  0xf8   :  { %v388_v5 = vmax.f32 %v1221_v4, 0.0  ;;  %v276_v6 = vpop.f32.mrb[13].mxu0  ;;  %1273 = vmatmul.mubr.msk.f32.gmra.mrb[10].mxu1 %vm53_vm0, %v386_v1 }
  0xf9   :  { %v387_v7 = vmax.f32 %v276_v6, 0.0 }
  0xfb   :  { %v1224_v8 = vpop.f32.mrb[14].mxu0  ;;  %1275 = vmatprep.mubr.msk.f32.mxu1 %vm53_vm0, %v387_v7 }
  0xfc   :  { %v390_v9 = vmax.f32 %v1224_v8, 0.0  ;;  %v286_v10 = vpop.f32.mrb[15].mxu0  ;;  %1276 = vmatmul.mubr.msk.f32.gmra.mrb[12].mxu1 %vm53_vm0, %v388_v5 }
  0xfd   :  { %v389_v11 = vmax.f32 %v286_v10, 0.0 }
  0xff   :  { %v1227_v12 = vpop.f32.mrb[16].mxu0  ;;  %1278 = vmatprep.mubr.msk.f32.mxu1 %vm53_vm0, %v389_v11 }
 0x100   :  { %v392_v13 = vmax.f32 %v1227_v12, 0.0  ;;  %v296_v14 = vpop.f32.mrb[17].mxu0  ;;  %1279 = vmatmul.mubr.msk.f32.gmra.mrb[14].mxu1 %vm53_vm0, %v390_v9 }
 0x101   :  { %v391_v15 = vmax.f32 %v296_v14, 0.0 }
 0x103   :  { %v1230_v16 = vpop.f32.mrb[18].mxu0  ;;  %1281 = vmatprep.mubr.msk.f32.mxu1 %vm53_vm0, %v391_v15 }
 0x104   :  { %v394_v17 = vmax.f32 %v1230_v16, 0.0  ;;  %v306_v18 = vpop.f32.mrb[19].mxu0  ;;  %1282 = vmatmul.mubr.msk.f32.gmra.mrb[16].mxu1 %vm53_vm0, %v392_v13 }
 0x105   :  { %v393_v19 = vmax.f32 %v306_v18, 0.0 }
 0x107   :  { %v1233_v20 = vpop.f32.mrb[20].mxu0  ;;  %1284 = vmatprep.mubr.msk.f32.mxu1 %vm53_vm0, %v393_v19 }
 0x108   :  { %v396_v21 = vmax.f32 %v1233_v20, 0.0  ;;  %v316_v22 = vpop.f32.mrb[21].mxu0  ;;  %1285 = vmatmul.mubr.msk.f32.gmra.mrb[18].mxu1 %vm53_vm0, %v394_v17 }
 0x109   :  { %v395_v23 = vmax.f32 %v316_v22, 0.0 }
 0x10b   :  { %v1236_v24 = vpop.f32.mrb[22].mxu0  ;;  %1287 = vmatprep.mubr.msk.f32.mxu1 %vm53_vm0, %v395_v23 }
 0x10c   :  { %v398_v25 = vmax.f32 %v1236_v24, 0.0  ;;  %v326_v26 = vpop.f32.mrb[23].mxu0  ;;  %1288 = vmatmul.mubr.msk.f32.gmra.mrb[20].mxu1 %vm53_vm0, %v396_v21 }
 0x10d   :  { %v397_v27 = vmax.f32 %v326_v26, 0.0 }
 0x10f   :  { %v1239_v28 = vpop.f32.mrb[24].mxu0  ;;  %1290 = vmatprep.mubr.msk.f32.mxu1 %vm53_vm0, %v397_v27 }
 0x110   :  { %v400_v29 = vmax.f32 %v1239_v28, 0.0  ;;  %v336_v30 = vpop.f32.mrb[25].mxu0  ;;  %1291 = vmatmul.mubr.msk.f32.gmra.mrb[22].mxu1 %vm53_vm0, %v398_v25 }
 0x111   :  { %v399_v31 = vmax.f32 %v336_v30, 0.0 }
 0x113   :  { %v1242_v32 = vpop.f32.mrb[26].mxu0  ;;  %1293 = vmatprep.mubr.msk.f32.mxu1 %vm53_vm0, %v399_v31 }
 0x114   :  { %v402_v33 = vmax.f32 %v1242_v32, 0.0  ;;  %v346_v34 = vpop.f32.mrb[27].mxu0  ;;  %1294 = vmatmul.mubr.msk.f32.gmra.mrb[24].mxu1 %vm53_vm0, %v400_v29 }
 0x115   :  { %v401_v35 = vmax.f32 %v346_v34, 0.0 }
 0x117   :  { %v1245_v36 = vpop.f32.mrb[28].mxu0  ;;  %1296 = vmatprep.mubr.msk.f32.mxu1 %vm53_vm0, %v401_v35 }
 0x118   :  { %v404_v37 = vmax.f32 %v1245_v36, 0.0  ;;  %v356_v38 = vpop.f32.mrb[29].mxu0  ;;  %1297 = vmatmul.mubr.msk.f32.gmra.mrb[26].mxu1 %vm53_vm0, %v402_v33 }
 0x119   :  { %v403_v39 = vmax.f32 %v356_v38, 0.0 }
 0x11b   :  { %v1248_v40 = vpop.f32.mrb[30].mxu0  ;;  %1299 = vmatprep.mubr.msk.f32.mxu1 %vm53_vm0, %v403_v39 }
 0x11c   :  { %v406_v41 = vmax.f32 %v1248_v40, 0.0  ;;  %v366_v42 = vpop.f32.mrb[31].mxu0  ;;  %1300 = vmatmul.mubr.msk.f32.gmra.mrb[28].mxu1 %vm53_vm0, %v404_v37 }
 0x11d   :  { %v405_v43 = vmax.f32 %v366_v42, 0.0 }
 0x11f   :  { %1302 = vmatprep.mubr.msk.f32.mxu1 %vm53_vm0, %v405_v43 }
 0x120   :  { %1303 = vmatmul.mubr.msk.f32.gmra.mrb[30].mxu1 %vm53_vm0, %v406_v41 }
 0x1b7   :  { %v1596_v44 = vpop.f32.mrb[0].mxu1 }
 0x1b8   :  { %v766_v45 = vmul.f32 1.442695, %v1596_v44  ;;  %v1599_v46 = vpop.f32.mrb[1].mxu1 }
 0x1b9   :  { %v764_v47 = vmul.f32 1.442695, %v1599_v46 }
 0x1ba   :  { %1322 = vpow2.f32 %v766_v45 }
 0x1bb   :  { %v1602_v48 = vpop.f32.mrb[2].mxu1  ;;  %1324 = vpow2.f32 %v764_v47 }
 0x1bc   :  { %v770_v49 = vmul.f32 1.442695, %v1602_v48  ;;  %v1605_v50 = vpop.f32.mrb[3].mxu1 }
 0x1bd   :  { %v768_v51 = vmul.f32 1.442695, %v1605_v50 }
 0x1be   :  { %1326 = vpow2.f32 %v770_v49 }
 0x1bf   :  { %v1608_v52 = vpop.f32.mrb[4].mxu1  ;;  %1328 = vpow2.f32 %v768_v51 }
 0x1c0   :  { %v1610_v53 = vpop.f32.mrb[5].mxu1  ;;  %v774_v55 = vmul.f32 1.442695, %v1608_v52 }
 0x1c1   :  { %v772_v54 = vmul.f32 1.442695, %v1610_v53 }
 0x1c3   :  { %1330 = vpow2.f32 %v772_v54  ;;  %v1614_v56 = vpop.f32.mrb[6].mxu1 }
 0x1c4   :  { %v1323_v57 = vpop.eup %1322  ;;  %v1616_v58 = vpop.f32.mrb[7].mxu1  ;;  %1332 = vpow2.f32 %v774_v55  ;;  %v778_v60 = vmul.f32 1.442695, %v1614_v56 }
 0x1c5   :  { %v776_v59 = vmul.f32 1.442695, %v1616_v58  ;;  %862 = vrot.lane.b32.xlu0 %v1323_v57, %s1386_s0  ;;  %v1325_v61 = vpop.eup %1324 }
 0x1c7   :  { %1334 = vpow2.f32 %v776_v59  ;;  %v1621_v62 = vpop.f32.mrb[8].mxu1 }
 0x1c8   :  { %v1327_v63 = vpop.eup %1326  ;;  %v1623_v0 = vpop.f32.mrb[9].mxu1  ;;  %1336 = vpow2.f32 %v778_v60  ;;  %v782_v2 = vmul.f32 1.442695, %v1621_v62 }
 0x1c9   :  { %v780_v1 = vmul.f32 1.442695, %v1623_v0  ;;  %860 = vrot.lane.b32.xlu0 %v1325_v61, %s1386_s0  ;;  %866 = vrot.lane.b32.xlu1 %v1327_v63, %s1386_s0  ;;  %v1329_v4 = vpop.eup %1328 }
 0x1cb   :  { %1338 = vpow2.f32 %v780_v1  ;;  %v1629_v3 = vpop.f32.mrb[10].mxu1 }
 0x1cc   :  { %v1631_v5 = vpop.f32.mrb[11].mxu1  ;;  %1340 = vpow2.f32 %v782_v2  ;;  %v786_v8 = vmul.f32 1.442695, %v1629_v3 }
 0x1cd   :  { %v1331_v6 = vpop.eup %1330  ;;  %v784_v7 = vmul.f32 1.442695, %v1631_v5  ;;  %864 = vrot.lane.b32.xlu1 %v1329_v4, %s1386_s0 }
 0x1ce   :  { %868 = vrot.lane.b32.xlu0 %v1331_v6, %s1386_s0  ;;  %v1333_v10 = vpop.eup %1332 }
 0x1cf   :  { %1342 = vpow2.f32 %v784_v7  ;;  %v1637_v9 = vpop.f32.mrb[12].mxu1 }
 0x1d0   :  { %v1639_v11 = vpop.f32.mrb[13].mxu1  ;;  %1344 = vpow2.f32 %v786_v8  ;;  %v790_v14 = vmul.f32 1.442695, %v1637_v9 }
 0x1d1   :  { %v1335_v12 = vpop.eup %1334  ;;  %v788_v13 = vmul.f32 1.442695, %v1639_v11  ;;  %870 = vrot.lane.b32.xlu1 %v1333_v10, %s1386_s0 }
 0x1d2   :  { %872 = vrot.lane.b32.xlu0 %v1335_v12, %s1386_s0  ;;  %v1337_v16 = vpop.eup %1336 }
 0x1d3   :  { %1346 = vpow2.f32 %v788_v13  ;;  %v1645_v15 = vpop.f32.mrb[14].mxu1 }
 0x1d4   :  { %v1647_v17 = vpop.f32.mrb[15].mxu1  ;;  %1348 = vpow2.f32 %v790_v14  ;;  %v794_v20 = vmul.f32 1.442695, %v1645_v15 }
 0x1d5   :  { %v1339_v18 = vpop.eup %1338  ;;  %v792_v19 = vmul.f32 1.442695, %v1647_v17  ;;  %874 = vrot.lane.b32.xlu1 %v1337_v16, %s1386_s0 }
 0x1d6   :  { %876 = vrot.lane.b32.xlu0 %v1339_v18, %s1386_s0  ;;  %v1341_v22 = vpop.eup %1340 }
 0x1d7   :  { %1350 = vpow2.f32 %v792_v19  ;;  %v1653_v21 = vpop.f32.mrb[16].mxu1 }
 0x1d8   :  { %v1655_v23 = vpop.f32.mrb[17].mxu1  ;;  %1352 = vpow2.f32 %v794_v20  ;;  %v798_v26 = vmul.f32 1.442695, %v1653_v21 }
 0x1d9   :  { %v1343_v24 = vpop.eup %1342  ;;  %v796_v25 = vmul.f32 1.442695, %v1655_v23  ;;  %878 = vrot.lane.b32.xlu1 %v1341_v22, %s1386_s0 }
 0x1da   :  { %880 = vrot.lane.b32.xlu0 %v1343_v24, %s1386_s0  ;;  %v1345_v28 = vpop.eup %1344 }
 0x1db   :  { %1354 = vpow2.f32 %v796_v25  ;;  %v1661_v27 = vpop.f32.mrb[18].mxu1 }
 0x1dc   :  { %v1663_v29 = vpop.f32.mrb[19].mxu1  ;;  %1356 = vpow2.f32 %v798_v26  ;;  %v802_v32 = vmul.f32 1.442695, %v1661_v27 }
 0x1dd   :  { %v1347_v30 = vpop.eup %1346  ;;  %v800_v31 = vmul.f32 1.442695, %v1663_v29  ;;  %882 = vrot.lane.b32.xlu1 %v1345_v28, %s1386_s0 }
 0x1de   :  { %884 = vrot.lane.b32.xlu0 %v1347_v30, %s1386_s0  ;;  %v1349_v34 = vpop.eup %1348 }
 0x1df   :  { %1358 = vpow2.f32 %v800_v31  ;;  %v1669_v33 = vpop.f32.mrb[20].mxu1 }
 0x1e0   :  { %v1671_v35 = vpop.f32.mrb[21].mxu1  ;;  %1360 = vpow2.f32 %v802_v32  ;;  %v806_v38 = vmul.f32 1.442695, %v1669_v33  ;;  %v733_v32 = vld [vmem:[%s1983_s3 + $0x8] sm:$0xff] }
 0x1e1   :  { %v1351_v36 = vpop.eup %1350  ;;  %v804_v37 = vmul.f32 1.442695, %v1671_v35  ;;  %886 = vrot.lane.b32.xlu1 %v1349_v34, %s1386_s0 }
 0x1e2   :  { %888 = vrot.lane.b32.xlu0 %v1351_v36, %s1386_s0  ;;  %v1353_v40 = vpop.eup %1352 }
 0x1e3   :  { %1362 = vpow2.f32 %v804_v37  ;;  %v1677_v39 = vpop.f32.mrb[22].mxu1  ;;  %v732_v37 = vld [vmem:[%s1983_s3] sm:$0xff] }
 0x1e4   :  { %v1679_v41 = vpop.f32.mrb[23].mxu1  ;;  %1364 = vpow2.f32 %v806_v38  ;;  %v810_v45 = vmul.f32 1.442695, %v1677_v39  ;;  %v735_v38 = vld [vmem:[%s1983_s3 + $0x18] sm:$0xff] }
 0x1e5   :  { %v1355_v42 = vpop.eup %1354  ;;  %v808_v43 = vmul.f32 1.442695, %v1679_v41  ;;  %890 = vrot.lane.b32.xlu1 %v1353_v40, %s1386_s0 }
 0x1e6   :  { %892 = vrot.lane.b32.xlu0 %v1355_v42, %s1386_s0  ;;  %v1357_v49 = vpop.eup %1356 }
 0x1e7   :  { %1366 = vpow2.f32 %v808_v43  ;;  %v1685_v47 = vpop.f32.mrb[24].mxu1 }
 0x1e8   :  { %v1687_v51 = vpop.f32.mrb[25].mxu1  ;;  %1368 = vpow2.f32 %v810_v45  ;;  %v814_v57 = vmul.f32 1.442695, %v1685_v47 }
 0x1e9   :  { %v1359_v54 = vpop.eup %1358  ;;  %v812_v55 = vmul.f32 1.442695, %v1687_v51  ;;  %894 = vrot.lane.b32.xlu1 %v1357_v49, %s1386_s0 }
 0x1ea   :  { %896 = vrot.lane.b32.xlu0 %v1359_v54, %s1386_s0  ;;  %v1361_v60 = vpop.eup %1360  ;;  %v734_v54 = vld [vmem:[%s1983_s3 + $0x10] sm:$0xff] }
 0x1eb   :  { %1370 = vpow2.f32 %v812_v55  ;;  %v1693_v59 = vpop.f32.mrb[26].mxu1 }
 0x1ec   :  { %v1695_v61 = vpop.f32.mrb[27].mxu1  ;;  %1372 = vpow2.f32 %v814_v57  ;;  %v818_v2 = vmul.f32 1.442695, %v1693_v59 }
 0x1ed   :  { %v1363_v63 = vpop.eup %1362  ;;  %v816_v1 = vmul.f32 1.442695, %v1695_v61  ;;  %898 = vrot.lane.b32.xlu1 %v1361_v60, %s1386_s0 }
 0x1ee   :  { %900 = vrot.lane.b32.xlu0 %v1363_v63, %s1386_s0  ;;  %v1365_v6 = vpop.eup %1364 }
 0x1ef   :  { %1374 = vpow2.f32 %v816_v1  ;;  %v1701_v4 = vpop.f32.mrb[28].mxu1 }
 0x1f0   :  { %v1703_v7 = vpop.f32.mrb[29].mxu1  ;;  %1376 = vpow2.f32 %v818_v2  ;;  %v822_v12 = vmul.f32 1.442695, %v1701_v4 }
 0x1f1   :  { %v1367_v8 = vpop.eup %1366  ;;  %v820_v10 = vmul.f32 1.442695, %v1703_v7  ;;  %902 = vrot.lane.b32.xlu1 %v1365_v6, %s1386_s0  ;;  %v738_v6 = vld [vmem:[%s1983_s3 + $0x30] sm:$0xff] }
 0x1f2   :  { %904 = vrot.lane.b32.xlu0 %v1367_v8, %s1386_s0  ;;  %v1369_v14 = vpop.eup %1368 }
 0x1f3   :  { %1378 = vpow2.f32 %v820_v10  ;;  %v1709_v13 = vpop.f32.mrb[30].mxu1 }
 0x1f4   :  { %v1711_v16 = vpop.f32.mrb[31].mxu1  ;;  %1380 = vpow2.f32 %v822_v12  ;;  %v826_v20 = vmul.f32 1.442695, %v1709_v13 }
 0x1f5   :  { %v1371_v18 = vpop.eup %1370  ;;  %v824_v19 = vmul.f32 1.442695, %v1711_v16  ;;  %906 = vrot.lane.b32.xlu1 %v1369_v14, %s1386_s0 }
 0x1f6   :  { %908 = vrot.lane.b32.xlu0 %v1371_v18, %s1386_s0  ;;  %v1373_v22 = vpop.eup %1372  ;;  %v739_v18 = vld [vmem:[%s1983_s3 + $0x38] sm:$0xff] }
 0x1f7   :  { %1382 = vpow2.f32 %v824_v19  ;;  %v740_v19 = vld [vmem:[%s1983_s3 + $0x40] sm:$0xff] }
 0x1f8   :  { %1384 = vpow2.f32 %v826_v20 }
 0x1f9   :  { %v1375_v24 = vpop.eup %1374  ;;  %910 = vrot.lane.b32.xlu1 %v1373_v22, %s1386_s0 }
 0x1fa   :  { %912 = vrot.lane.b32.xlu0 %v1375_v24, %s1386_s0  ;;  %v1377_v25 = vpop.eup %1376 }
 0x1fd   :  { %v1379_v26 = vpop.eup %1378  ;;  %914 = vrot.lane.b32.xlu1 %v1377_v25, %s1386_s0 }
 0x1fe   :  { %916 = vrot.lane.b32.xlu0 %v1379_v26, %s1386_s0  ;;  %v1381_v28 = vpop.eup %1380  ;;  %v741_v26 = vld [vmem:[%s1983_s3 + $0x48] sm:$0xff] }
 0x201   :  { %v1383_v30 = vpop.eup %1382  ;;  %918 = vrot.lane.b32.xlu1 %v1381_v28, %s1386_s0  ;;  %v742_v28 = vld [vmem:[%s1983_s3 + $0x50] sm:$0xff] }
 0x202   :  { %920 = vrot.lane.b32.xlu0 %v1383_v30, %s1386_s0  ;;  %v1385_v31 = vpop.eup %1384 }
 0x205   :  { %922 = vrot.lane.b32.xlu1 %v1385_v31, %s1386_s0 }
 0x237   :  { %v863_v34 = vpop.permute.xlu0 %862 }
 0x238   :  { %v957_v36 = vmul.f32 %v863_v34, %v733_v32 }
 0x23a   :  { %v989_v40 = vadd.f32 %v1596_v44, %v957_v36  ;;  %v736_v44 = vld [vmem:[%s1983_s3 + $0x20] sm:$0xff]  ;;  %v743_v36 = vld [vmem:[%s1983_s3 + $0x58] sm:$0xff] }
 0x23b   :  { %v861_v42 = vpop.permute.xlu0 %860  ;;  %v867_v43 = vpop.permute.xlu1 %866 }
 0x23c   :  { %1022 = vst.msk [vmem:[%s1984_s4 + $0x8] sm:$0xff] %vm1020_vm1, %v989_v40  ;;  %v956_v45 = vmul.f32 %v861_v42, %v732_v37  ;;  %v959_v49 = vmul.f32 %v867_v43, %v735_v38  ;;  %v744_v37 = vld [vmem:[%s1983_s3 + $0x60] sm:$0xff] }
 0x23e   :  { %v988_v55 = vadd.f32 %v956_v45, %v1599_v46  ;;  %v991_v57 = vadd.f32 %v1602_v48, %v959_v49  ;;  %v737_v48 = vld [vmem:[%s1983_s3 + $0x28] sm:$0xff]  ;;  %v746_v49 = vld [vmem:[%s1983_s3 + $0x70] sm:$0xff] }
 0x23f   :  { %v865_v60 = vpop.permute.xlu1 %864  ;;  %v745_v45 = vld [vmem:[%s1983_s3 + $0x68] sm:$0xff] }
 0x240   :  { %1021 = vst.msk [vmem:[%s1984_s4] sm:$0xff] %vm1020_vm1, %v988_v55  ;;  %1024 = vst.msk [vmem:[%s1984_s4 + $0x18] sm:$0xff] %vm1020_vm1, %v991_v57  ;;  %v958_v63 = vmul.f32 %v865_v60, %v734_v54  ;;  %v869_v1 = vpop.permute.xlu0 %868  ;;  %v747_v60 = vld [vmem:[%s1983_s3 + $0x78] sm:$0xff] }
 0x241   :  { %v960_v46 = vmul.f32 %v869_v1, %v736_v44 }
 0x242   :  { %v990_v2 = vadd.f32 %v958_v63, %v1605_v50  ;;  %v748_v63 = vld [vmem:[%s1983_s3 + $0x80] sm:$0xff] }
 0x243   :  { %v992_v8 = vadd.f32 %v960_v46, %v1610_v53  ;;  %v871_v10 = vpop.permute.xlu1 %870 }
 0x244   :  { %1023 = vst.msk [vmem:[%s1984_s4 + $0x10] sm:$0xff] %vm1020_vm1, %v990_v2  ;;  %v961_v12 = vmul.f32 %v871_v10, %v737_v48  ;;  %v873_v14 = vpop.permute.xlu0 %872 }
 0x245   :  { %1025 = vst.msk [vmem:[%s1984_s4 + $0x20] sm:$0xff] %vm1020_vm1, %v992_v8  ;;  %v962_v50 = vmul.f32 %v873_v14, %v738_v6  ;;  %v749_v6 = vld [vmem:[%s1983_s3 + $0x88] sm:$0xff]  ;;  %v750_v8 = vld [vmem:[%s1983_s3 + $0x90] sm:$0xff] }
 0x246   :  { %v993_v53 = vadd.f32 %v1608_v52, %v961_v12 }
 0x247   :  { %v994_v20 = vadd.f32 %v962_v50, %v1616_v58  ;;  %v875_v22 = vpop.permute.xlu1 %874 }
 0x248   :  { %1026 = vst.msk [vmem:[%s1984_s4 + $0x28] sm:$0xff] %vm1020_vm1, %v993_v53  ;;  %v963_v24 = vmul.f32 %v875_v22, %v739_v18  ;;  %v877_v25 = vpop.permute.xlu0 %876  ;;  %v751_v18 = vld [vmem:[%s1983_s3 + $0x98] sm:$0xff]  ;;  %v752_v53 = vld [vmem:[%s1983_s3 + $0xa0] sm:$0xff] }
 0x249   :  { %1027 = vst.msk [vmem:[%s1984_s4 + $0x30] sm:$0xff] %vm1020_vm1, %v994_v20  ;;  %v964_v52 = vmul.f32 %v877_v25, %v740_v19  ;;  %v753_v25 = vld [vmem:[%s1983_s3 + $0xa8] sm:$0xff] }
 0x24a   :  { %v995_v58 = vadd.f32 %v1614_v56, %v963_v24 }
 0x24b   :  { %v996_v30 = vadd.f32 %v964_v52, %v1623_v0  ;;  %v879_v31 = vpop.permute.xlu1 %878  ;;  %v754_v52 = vld [vmem:[%s1983_s3 + $0xb0] sm:$0xff] }
 0x24c   :  { %1028 = vst.msk [vmem:[%s1984_s4 + $0x38] sm:$0xff] %vm1020_vm1, %v995_v58  ;;  %v965_v32 = vmul.f32 %v879_v31, %v741_v26  ;;  %v881_v34 = vpop.permute.xlu0 %880  ;;  %v755_v31 = vld [vmem:[%s1983_s3 + $0xb8] sm:$0xff] }
 0x24d   :  { %1029 = vst.msk [vmem:[%s1984_s4 + $0x40] sm:$0xff] %vm1020_vm1, %v996_v30  ;;  %v966_v56 = vmul.f32 %v881_v34, %v742_v28 }
 0x24e   :  { %v997_v0 = vadd.f32 %v1621_v62, %v965_v32  ;;  %v756_v32 = vld [vmem:[%s1983_s3 + $0xc0] sm:$0xff] }
 0x24f   :  { %v998_v38 = vadd.f32 %v966_v56, %v1631_v5  ;;  %v883_v40 = vpop.permute.xlu1 %882 }
 0x250   :  { %1030 = vst.msk [vmem:[%s1984_s4 + $0x48] sm:$0xff] %vm1020_vm1, %v997_v0  ;;  %v967_v42 = vmul.f32 %v883_v40, %v743_v36  ;;  %v885_v43 = vpop.permute.xlu0 %884 }
 0x251   :  { %1031 = vst.msk [vmem:[%s1984_s4 + $0x50] sm:$0xff] %vm1020_vm1, %v998_v38  ;;  %v968_v62 = vmul.f32 %v885_v43, %v744_v37  ;;  %v757_v37 = vld [vmem:[%s1983_s3 + $0xc8] sm:$0xff]  ;;  %v758_v38 = vld [vmem:[%s1983_s3 + $0xd0] sm:$0xff] }
 0x252   :  { %v999_v5 = vadd.f32 %v1629_v3, %v967_v42 }
 0x253   :  { %v1000_v54 = vadd.f32 %v968_v62, %v1639_v11  ;;  %v887_v55 = vpop.permute.xlu1 %886 }
 0x254   :  { %1032 = vst.msk [vmem:[%s1984_s4 + $0x58] sm:$0xff] %vm1020_vm1, %v999_v5  ;;  %v969_v57 = vmul.f32 %v887_v55, %v745_v45  ;;  %v889_v44 = vpop.permute.xlu0 %888  ;;  %v759_v45 = vld [vmem:[%s1983_s3 + $0xd8] sm:$0xff]  ;;  %v760_v5 = vld [vmem:[%s1983_s3 + $0xe0] sm:$0xff] }
 0x255   :  { %1033 = vst.msk [vmem:[%s1984_s4 + $0x60] sm:$0xff] %vm1020_vm1, %v1000_v54  ;;  %v970_v3 = vmul.f32 %v889_v44, %v746_v49  ;;  %v761_v44 = vld [vmem:[%s1983_s3 + $0xe8] sm:$0xff] }
 0x256   :  { %v1001_v11 = vadd.f32 %v1637_v9, %v969_v57 }
 0x257   :  { %v1002_v1 = vadd.f32 %v970_v3, %v1647_v17  ;;  %v891_v46 = vpop.permute.xlu1 %890  ;;  %v762_v3 = vld [vmem:[%s1983_s3 + $0xf0] sm:$0xff] }
 0x258   :  { %1034 = vst.msk [vmem:[%s1984_s4 + $0x68] sm:$0xff] %vm1020_vm1, %v1001_v11  ;;  %v971_v48 = vmul.f32 %v891_v46, %v747_v60  ;;  %v893_v2 = vpop.permute.xlu0 %892  ;;  %v763_v46 = vld [vmem:[%s1983_s3 + $0xf8] sm:$0xff] }
 0x259   :  { %1035 = vst.msk [vmem:[%s1984_s4 + $0x70] sm:$0xff] %vm1020_vm1, %v1002_v1  ;;  %v972_v9 = vmul.f32 %v893_v2, %v748_v63 }
 0x25a   :  { %v1003_v17 = vadd.f32 %v1645_v15, %v971_v48 }
 0x25b   :  { %v1004_v10 = vadd.f32 %v972_v9, %v1655_v23  ;;  %v895_v12 = vpop.permute.xlu1 %894 }
 0x25c   :  { %1036 = vst.msk [vmem:[%s1984_s4 + $0x78] sm:$0xff] %vm1020_vm1, %v1003_v17  ;;  %v973_v14 = vmul.f32 %v895_v12, %v749_v6  ;;  %v897_v50 = vpop.permute.xlu0 %896 }
 0x25d   :  { %1037 = vst.msk [vmem:[%s1984_s4 + $0x80] sm:$0xff] %vm1020_vm1, %v1004_v10  ;;  %v974_v15 = vmul.f32 %v897_v50, %v750_v8 }
 0x25e   :  { %v1005_v23 = vadd.f32 %v1653_v21, %v973_v14 }
 0x25f   :  { %v1006_v19 = vadd.f32 %v974_v15, %v1663_v29  ;;  %v899_v20 = vpop.permute.xlu1 %898 }
 0x260   :  { %1038 = vst.msk [vmem:[%s1984_s4 + $0x88] sm:$0xff] %vm1020_vm1, %v1005_v23  ;;  %v975_v22 = vmul.f32 %v899_v20, %v751_v18  ;;  %v901_v24 = vpop.permute.xlu0 %900 }
 0x261   :  { %1039 = vst.msk [vmem:[%s1984_s4 + $0x90] sm:$0xff] %vm1020_vm1, %v1006_v19  ;;  %v976_v21 = vmul.f32 %v901_v24, %v752_v53 }
 0x262   :  { %v1007_v29 = vadd.f32 %v1661_v27, %v975_v22 }
 0x263   :  { %v1008_v26 = vadd.f32 %v976_v21, %v1671_v35  ;;  %v903_v58 = vpop.permute.xlu1 %902 }
 0x264   :  { %1040 = vst.msk [vmem:[%s1984_s4 + $0x98] sm:$0xff] %vm1020_vm1, %v1007_v29  ;;  %v977_v28 = vmul.f32 %v903_v58, %v753_v25  ;;  %v905_v30 = vpop.permute.xlu0 %904 }
 0x265   :  { %1041 = vst.msk [vmem:[%s1984_s4 + $0xa0] sm:$0xff] %vm1020_vm1, %v1008_v26  ;;  %v978_v27 = vmul.f32 %v905_v30, %v754_v52 }
 0x266   :  { %v1009_v35 = vadd.f32 %v1669_v33, %v977_v28 }
 0x267   :  { %v1010_v34 = vadd.f32 %v978_v27, %v1679_v41  ;;  %v907_v56 = vpop.permute.xlu1 %906 }
 0x268   :  { %1042 = vst.msk [vmem:[%s1984_s4 + $0xa8] sm:$0xff] %vm1020_vm1, %v1009_v35  ;;  %v979_v36 = vmul.f32 %v907_v56, %v755_v31  ;;  %v909_v0 = vpop.permute.xlu0 %908 }
 0x269   :  { %1043 = vst.msk [vmem:[%s1984_s4 + $0xb0] sm:$0xff] %vm1020_vm1, %v1010_v34  ;;  %v980_v33 = vmul.f32 %v909_v0, %v756_v32 }
 0x26a   :  { %v1011_v41 = vadd.f32 %v1677_v39, %v979_v36 }
 0x26b   :  { %v1012_v40 = vadd.f32 %v980_v33, %v1687_v51  ;;  %v911_v42 = vpop.permute.xlu1 %910 }
 0x26c   :  { %1044 = vst.msk [vmem:[%s1984_s4 + $0xb8] sm:$0xff] %vm1020_vm1, %v1011_v41  ;;  %v981_v43 = vmul.f32 %v911_v42, %v757_v37  ;;  %v913_v62 = vpop.permute.xlu0 %912 }
 0x26d   :  { %1045 = vst.msk [vmem:[%s1984_s4 + $0xc0] sm:$0xff] %vm1020_vm1, %v1012_v40  ;;  %v982_v39 = vmul.f32 %v913_v62, %v758_v38 }
 0x26e   :  { %v1013_v51 = vadd.f32 %v1685_v47, %v981_v43 }
 0x26f   :  { %v1014_v49 = vadd.f32 %v982_v39, %v1695_v61  ;;  %v915_v54 = vpop.permute.xlu1 %914 }
 0x270   :  { %1046 = vst.msk [vmem:[%s1984_s4 + $0xc8] sm:$0xff] %vm1020_vm1, %v1013_v51  ;;  %v983_v55 = vmul.f32 %v915_v54, %v759_v45  ;;  %v917_v57 = vpop.permute.xlu0 %916 }
 0x271   :  { %1047 = vst.msk [vmem:[%s1984_s4 + $0xd0] sm:$0xff] %vm1020_vm1, %v1014_v49  ;;  %v984_v47 = vmul.f32 %v917_v57, %v760_v5 }
 0x272   :  { %v1015_v61 = vadd.f32 %v1693_v59, %v983_v55 }
 0x273   :  { %v1016_v60 = vadd.f32 %v984_v47, %v1703_v7  ;;  %v919_v11 = vpop.permute.xlu1 %918 }
 0x274   :  { %1048 = vst.msk [vmem:[%s1984_s4 + $0xd8] sm:$0xff] %vm1020_vm1, %v1015_v61  ;;  %v985_v63 = vmul.f32 %v919_v11, %v761_v44  ;;  %v921_v1 = vpop.permute.xlu0 %920 }
 0x275   :  { %1049 = vst.msk [vmem:[%s1984_s4 + $0xe0] sm:$0xff] %vm1020_vm1, %v1016_v60  ;;  %v986_v59 = vmul.f32 %v921_v1, %v762_v3 }
 0x276   :  { %v1017_v7 = vadd.f32 %v1701_v4, %v985_v63 }
 0x277   :  { %v1018_v48 = vadd.f32 %v986_v59, %v1711_v16  ;;  %v923_v2 = vpop.permute.xlu1 %922 }
 0x278   :  { %1050 = vst.msk [vmem:[%s1984_s4 + $0xe8] sm:$0xff] %vm1020_vm1, %v1017_v7  ;;  %v987_v9 = vmul.f32 %v923_v2, %v763_v46 }
 0x279   :  { %1051 = vst.msk [vmem:[%s1984_s4 + $0xf0] sm:$0xff] %vm1020_vm1, %v1018_v48 }
 0x27a   :  { %v1019_v6 = vadd.f32 %v1709_v13, %v987_v9 }
 0x27c   :  { %1052 = vst.msk [vmem:[%s1984_s4 + $0xf8] sm:$0xff] %vm1020_vm1, %v1019_v6 }

</bundles_post_ra>
